<compile_context>
chip_gen: v7x
topology: tpu7x:2x2x1
jax: 0.10.0
libtpu: 0.0.40
codegen_flags: <defaults>
</compile_context>

<pallas_src>
import functools

import jax
import jax.numpy as jnp
from jax import lax
from jax.experimental import pallas as pl
from jax.experimental.pallas import tpu as pltpu

EPS = 1e-15


# ----------------------------------------------------------------------------
# Fused forward kernel.
# ----------------------------------------------------------------------------
def fused_forward_kernel(x_ref, gv_ref, ge_ref, cs_ref, inv_ref,
                         win_ref, bin_ref,
                         w1_ref, b1_ref, w2a_ref, w2b_ref, b2_ref,
                         w3_ref, b3_ref,
                         wc1_ref, bc1_ref, wc2_ref, bc2_ref,
                         o_ref, *, n_rules, nlayer, alpha):
    f32 = jnp.float32
    bf16 = jnp.bfloat16

    # --- TSK input fuzzifier: x * max_r exp(-(x - c_r)^2 * inv_r) ------------
    x = x_ref[...]                                       # [N, F] f32
    w = None
    for r in range(n_rules):                             # small static unroll
        c = cs_ref[pl.ds(r, 1), :]                       # [1, F]
        inv = inv_ref[pl.ds(r, 1), :]                    # [1, F] (precomputed 1/(2v^2+eps))
        diff = x - c
        d = jnp.exp(-(diff * diff) * inv)                # exp on EUP, rest on VPU
        w = d if w is None else jnp.maximum(w, d)
    h = x * w                                            # [N, F] f32 (dropout = id, eval)

    # --- lin_in + ReLU --------------------------------------------------------
    h = jnp.dot(h.astype(bf16), win_ref[...], preferred_element_type=f32) + bin_ref[...]
    h = jnp.maximum(h, 0.0)                              # [N, H] f32
    h0 = h

    Gv = gv_ref[...]                                     # [nnz, N] bf16 one-hot (exact)
    Ge = ge_ref[...]                                     # [nnz, E] bf16 one-hot (exact)
    contract_nnz = (((0,), (0,)), ((), ()))              # lhs^T @ rhs over the nnz axis

    # --- nlayer x EquivSetConv (aggr='add', act=ReLU), h stays resident ------
    for _ in range(nlayer):
        hb = h.astype(bf16)
        # single gather pass per layer: Xvg = X[vertex]
        Xvg = jnp.dot(Gv, hb, preferred_element_type=f32)                    # [nnz, H]
        Xvgb = Xvg.astype(bf16)
        # W1(X)[vertex] == W1(X[vertex])  (gather commutes with row-wise Linear)
        Xve = jnp.dot(Xvgb, w1_ref[...], preferred_element_type=f32) + b1_ref[...]
        # scatter-add over edges: Xe = Ge^T @ Xve  (no Se materialized)
        Xe = lax.dot_general(Ge, Xve.astype(bf16), contract_nnz,
                             preferred_element_type=f32)                     # [E, H]
        # apply W2b + b2 at E rows, then gather back (Ge rows are one-hot)
        T = jnp.dot(Xe.astype(bf16), w2b_ref[...], preferred_element_type=f32) + b2_ref[...]
        Xev2 = (jnp.dot(Xvgb, w2a_ref[...], preferred_element_type=f32)
                + jnp.dot(Ge, T.astype(bf16), preferred_element_type=f32))   # [nnz, H]
        # scatter-add over vertices: Xv = Gv^T @ Xev2  (no Sv materialized)
        Xv = lax.dot_general(Gv, Xev2.astype(bf16), contract_nnz,
                             preferred_element_type=f32)                     # [N, H]
        Xr = (1.0 - alpha) * Xv + alpha * h0
        h = jnp.dot(Xr.astype(bf16), w3_ref[...], preferred_element_type=f32) + b3_ref[...]
        h = jnp.maximum(h, 0.0)                          # self.act = ReLU (every layer)

    # --- classifier: Linear -> ReLU -> Linear, lane-dense padded output ------
    hc = jnp.dot(h.astype(bf16), wc1_ref[...], preferred_element_type=f32) + bc1_ref[...]
    hc = jnp.maximum(hc, 0.0)
    o_ref[...] = jnp.dot(hc.astype(bf16), wc2_ref[...], preferred_element_type=f32) + bc2_ref[...]


# ----------------------------------------------------------------------------
# Wrapper: build incidence / fuzzifier constants, launch the single fused call.
# ----------------------------------------------------------------------------
def fhrli_forward_pallas(x, vertex, edges, params, *, num_edges, nlayer, alpha):
    N, F = x.shape
    H = params["W_in"].shape[1]
    CH = params["Wc1"].shape[1]
    C = params["Wc2"].shape[1]
    R = params["Cs"].shape[1]
    E = num_edges

    f32, bf16 = jnp.float32, jnp.bfloat16

    # Dense one-hot incidence operators (exact in bf16). Only the gather-direction
    # matrices are built; scatter direction is a dot_general contraction in-kernel.
    Gv = jax.nn.one_hot(vertex, N, dtype=bf16)           # [nnz, N]
    Ge = jax.nn.one_hot(edges, E, dtype=bf16)            # [nnz, E]

    # Fuzzifier constants, rule-major, reciprocal denominator precomputed.
    cs_t = params["Cs"].T.astype(f32)                    # [R, F]
    inv_t = (1.0 / (2.0 * params["Vs"] ** 2 + EPS)).T.astype(f32)

    # Lane-dense classifier output: pad C -> multiple of 128, slice afterwards.
    CPAD = max(128, ((C + 127) // 128) * 128)
    wc2_p = jnp.zeros((CH, CPAD), f32).at[:, :C].set(params["Wc2"]).astype(bf16)
    bc2_p = jnp.zeros((1, CPAD), f32).at[0, :C].set(params["bc2"])

    row = lambda b: b.reshape(1, -1).astype(f32)         # biases stay f32 (post-acc add)
    wb = lambda w: w.astype(bf16)                        # weights feed the MXU in bf16

    inputs = (
        x.astype(f32), Gv, Ge, cs_t, inv_t,
        wb(params["W_in"]), row(params["b_in"]),
        wb(params["W1"]), row(params["b1"]),
        wb(params["W2a"]), wb(params["W2b"]), row(params["b2"]),
        wb(params["W3"]), row(params["b3"]),
        wb(params["Wc1"]), row(params["bc1"]),
        wc2_p, bc2_p,
    )

    kern = functools.partial(fused_forward_kernel, n_rules=R, nlayer=nlayer, alpha=alpha)
    full = lambda shape: pl.BlockSpec(shape, lambda i: (0,) * len(shape))

    out_p = pl.pallas_call(
        kern,
        out_shape=jax.ShapeDtypeStruct((N, CPAD), f32),
        grid=(1,),
        in_specs=[full(a.shape) for a in inputs],
        out_specs=full((N, CPAD)),
        compiler_params=pltpu.CompilerParams(vmem_limit_bytes=32 * 1024 * 1024),
    )(*inputs)
    return out_p[:, :C]


# ----------------------------------------------------------------------------
# Pure-JAX f32 reference mirroring the PyTorch semantics (eval mode).
# ----------------------------------------------------------------------------
def fhrli_forward_ref(x, vertex, edges, params, *, num_edges, nlayer, alpha):
    N = x.shape[0]
    fz = jnp.exp(-((x[:, :, None] - params["Cs"][None]) ** 2)
                 / (2.0 * params["Vs"][None] ** 2 + EPS))
    h = x * jnp.max(fz, axis=2)
    h = jax.nn.relu(h @ params["W_in"] + params["b_in"])
    h0 = h
    for _ in range(nlayer):
        Xw1 = h @ params["W1"] + params["b1"]
        Xve = Xw1[vertex]
        Xe = jax.ops.segment_sum(Xve, edges, num_segments=num_edges)
        Xev = Xe[edges]
        cat = jnp.concatenate([h[vertex], Xev], axis=-1)
        W2 = jnp.concatenate([params["W2a"], params["W2b"]], axis=0)
        Xev2 = cat @ W2 + params["b2"]
        Xv = jax.ops.segment_sum(Xev2, vertex, num_segments=N)
        Xr = (1.0 - alpha) * Xv + alpha * h0
        h = jax.nn.relu(Xr @ params["W3"] + params["b3"])
    hcls = jax.nn.relu(h @ params["Wc1"] + params["bc1"])
    return hcls @ params["Wc2"] + params["bc2"]


if __name__ == "__main__":
    # small deterministic problem
    N, F, H, R, C = 32, 16, 32, 8, 4        # nodes, features, hidden, rules, classes
    NUM_EDGES, NNZ = 8, 64                   # hyperedges, incidence pairs
    NLAYER, ALPHA, CH = 2, 0.5, 32           # conv layers, restart alpha, classifier hidden

    key = jax.random.PRNGKey(0)
    keys = jax.random.split(key, 16)

    x = jax.random.normal(keys[0], (N, F), dtype=jnp.float32)
    vertex = jax.random.randint(keys[1], (NNZ,), 0, N)
    edges = jax.random.randint(keys[2], (NNZ,), 0, NUM_EDGES)

    def winit(k, shape, scale=0.15):
        return scale * jax.random.normal(k, shape, dtype=jnp.float32)

    params = {
        # TSK fuzzifier: Normal(mean=1, std=0.2) as in reset_parameters
        "Cs": 1.0 + 0.2 * jax.random.normal(keys[3], (F, R), dtype=jnp.float32),
        "Vs": 1.0 + 0.2 * jax.random.normal(keys[4], (F, R), dtype=jnp.float32),
        # lin_in
        "W_in": winit(keys[5], (F, H)), "b_in": winit(keys[6], (H,)),
        # EquivSetConv (MLP_num_layers=1 => single Linear each)
        "W1": winit(keys[7], (H, H)), "b1": winit(keys[8], (H,)),
        "W2a": winit(keys[9], (H, H)), "W2b": winit(keys[10], (H, H)),
        "b2": winit(keys[11], (H,)),
        "W3": winit(keys[12], (H, H)), "b3": winit(keys[13], (H,)),
        # classifier (Classifier_num_layers=2)
        "Wc1": winit(keys[14], (H, CH)), "bc1": jnp.zeros((CH,), jnp.float32),
        "Wc2": winit(keys[15], (CH, C)), "bc2": jnp.zeros((C,), jnp.float32),
    }

    out = fhrli_forward_pallas(x, vertex, edges, params,
                               num_edges=NUM_EDGES, nlayer=NLAYER, alpha=ALPHA)
    out = jax.block_until_ready(out)

    ref = fhrli_forward_ref(x, vertex, edges, params,
                            num_edges=NUM_EDGES, nlayer=NLAYER, alpha=ALPHA)
    ref = jax.block_until_ready(ref)

    assert out.shape == (N, C), out.shape
    assert bool(jnp.all(jnp.isfinite(out)))
    # bf16 MXU operands (f32 accumulation) vs. the f32 reference -> ~1% level diffs.
    max_err = float(jnp.max(jnp.abs(out - ref)))
    assert bool(jnp.allclose(out, ref, rtol=5e-2, atol=3e-2)), max_err

    print("KERNEL_OK")
</pallas_src>

<mosaic_0001>
module attributes {stable_mosaic.version = 11 : i64} {
  func.func @fused_forward_kernel(%arg0: i32, %arg1: memref<32x16xf32, #tpu.memory_space<vmem>>, %arg2: memref<64x32xbf16, #tpu.memory_space<vmem>>, %arg3: memref<64x8xbf16, #tpu.memory_space<vmem>>, %arg4: memref<8x16xf32, #tpu.memory_space<vmem>>, %arg5: memref<8x16xf32, #tpu.memory_space<vmem>>, %arg6: memref<16x32xbf16, #tpu.memory_space<vmem>>, %arg7: memref<1x32xf32, #tpu.memory_space<vmem>>, %arg8: memref<32x32xbf16, #tpu.memory_space<vmem>>, %arg9: memref<1x32xf32, #tpu.memory_space<vmem>>, %arg10: memref<32x32xbf16, #tpu.memory_space<vmem>>, %arg11: memref<32x32xbf16, #tpu.memory_space<vmem>>, %arg12: memref<1x32xf32, #tpu.memory_space<vmem>>, %arg13: memref<32x32xbf16, #tpu.memory_space<vmem>>, %arg14: memref<1x32xf32, #tpu.memory_space<vmem>>, %arg15: memref<32x32xbf16, #tpu.memory_space<vmem>>, %arg16: memref<1x32xf32, #tpu.memory_space<vmem>>, %arg17: memref<32x128xbf16, #tpu.memory_space<vmem>>, %arg18: memref<1x128xf32, #tpu.memory_space<vmem>>, %arg19: memref<32x128xf32, #tpu.memory_space<vmem>>) attributes {dimension_semantics = [#tpu.dimension_semantics<arbitrary>], iteration_bounds = array<i64: 1>, scalar_prefetch = 0 : i64, scratch_operands = 0 : i64, tpu.core_type = #tpu.core_type<tc>, window_params = [{pipeline_mode = #tpu.pipeline_mode<synchronous>, transform_indices = @transform_0, window_bounds = array<i64: 32, 16>}, {pipeline_mode = #tpu.pipeline_mode<synchronous>, transform_indices = @transform_1, window_bounds = array<i64: 64, 32>}, {pipeline_mode = #tpu.pipeline_mode<synchronous>, transform_indices = @transform_2, window_bounds = array<i64: 64, 8>}, {pipeline_mode = #tpu.pipeline_mode<synchronous>, transform_indices = @transform_3, window_bounds = array<i64: 8, 16>}, {pipeline_mode = #tpu.pipeline_mode<synchronous>, transform_indices = @transform_4, window_bounds = array<i64: 8, 16>}, {pipeline_mode = #tpu.pipeline_mode<synchronous>, transform_indices = @transform_5, window_bounds = array<i64: 16, 32>}, {pipeline_mode = #tpu.pipeline_mode<synchronous>, transform_indices = @transform_6, window_bounds = array<i64: 1, 32>}, {pipeline_mode = #tpu.pipeline_mode<synchronous>, transform_indices = @transform_7, window_bounds = array<i64: 32, 32>}, {pipeline_mode = #tpu.pipeline_mode<synchronous>, transform_indices = @transform_8, window_bounds = array<i64: 1, 32>}, {pipeline_mode = #tpu.pipeline_mode<synchronous>, transform_indices = @transform_9, window_bounds = array<i64: 32, 32>}, {pipeline_mode = #tpu.pipeline_mode<synchronous>, transform_indices = @transform_10, window_bounds = array<i64: 32, 32>}, {pipeline_mode = #tpu.pipeline_mode<synchronous>, transform_indices = @transform_11, window_bounds = array<i64: 1, 32>}, {pipeline_mode = #tpu.pipeline_mode<synchronous>, transform_indices = @transform_12, window_bounds = array<i64: 32, 32>}, {pipeline_mode = #tpu.pipeline_mode<synchronous>, transform_indices = @transform_13, window_bounds = array<i64: 1, 32>}, {pipeline_mode = #tpu.pipeline_mode<synchronous>, transform_indices = @transform_14, window_bounds = array<i64: 32, 32>}, {pipeline_mode = #tpu.pipeline_mode<synchronous>, transform_indices = @transform_15, window_bounds = array<i64: 1, 32>}, {pipeline_mode = #tpu.pipeline_mode<synchronous>, transform_indices = @transform_16, window_bounds = array<i64: 32, 128>}, {pipeline_mode = #tpu.pipeline_mode<synchronous>, transform_indices = @transform_17, window_bounds = array<i64: 1, 128>}, {pipeline_mode = #tpu.pipeline_mode<synchronous>, transform_indices = @transform_18, window_bounds = array<i64: 32, 128>}]} {
    %c0 = arith.constant 0 : index
    %c0_0 = arith.constant 0 : index
    %0 = vector.load %arg1[%c0, %c0_0] : memref<32x16xf32, #tpu.memory_space<vmem>>, vector<32x16xf32>
    %c0_1 = arith.constant 0 : index
    %c0_2 = arith.constant 0 : index
    %1 = vector.load %arg4[%c0_1, %c0_2] : memref<8x16xf32, #tpu.memory_space<vmem>>, vector<1x16xf32>
    %c0_3 = arith.constant 0 : index
    %c0_4 = arith.constant 0 : index
    %2 = vector.load %arg5[%c0_3, %c0_4] : memref<8x16xf32, #tpu.memory_space<vmem>>, vector<1x16xf32>
    %3 = vector.broadcast %1 : vector<1x16xf32> to vector<32x16xf32>
    %4 = arith.subf %0, %3 : vector<32x16xf32>
    %5 = arith.mulf %4, %4 : vector<32x16xf32>
    %cst = arith.constant 0.000000e+00 : f32
    %6 = vector.broadcast %cst : f32 to vector<32x16xf32>
    %7 = arith.subf %6, %5 : vector<32x16xf32>
    %8 = vector.broadcast %2 : vector<1x16xf32> to vector<32x16xf32>
    %9 = arith.mulf %7, %8 : vector<32x16xf32>
    %10 = math.exp %9 : vector<32x16xf32>
    %c1 = arith.constant 1 : index
    %c0_5 = arith.constant 0 : index
    %11 = vector.load %arg4[%c1, %c0_5] : memref<8x16xf32, #tpu.memory_space<vmem>>, vector<1x16xf32>
    %c1_6 = arith.constant 1 : index
    %c0_7 = arith.constant 0 : index
    %12 = vector.load %arg5[%c1_6, %c0_7] : memref<8x16xf32, #tpu.memory_space<vmem>>, vector<1x16xf32>
    %13 = vector.broadcast %11 : vector<1x16xf32> to vector<32x16xf32>
    %14 = arith.subf %0, %13 : vector<32x16xf32>
    %15 = arith.mulf %14, %14 : vector<32x16xf32>
    %cst_8 = arith.constant 0.000000e+00 : f32
    %16 = vector.broadcast %cst_8 : f32 to vector<32x16xf32>
    %17 = arith.subf %16, %15 : vector<32x16xf32>
    %18 = vector.broadcast %12 : vector<1x16xf32> to vector<32x16xf32>
    %19 = arith.mulf %17, %18 : vector<32x16xf32>
    %20 = math.exp %19 : vector<32x16xf32>
    %21 = arith.maximumf %10, %20 : vector<32x16xf32>
    %c2 = arith.constant 2 : index
    %c0_9 = arith.constant 0 : index
    %22 = vector.load %arg4[%c2, %c0_9] : memref<8x16xf32, #tpu.memory_space<vmem>>, vector<1x16xf32>
    %c2_10 = arith.constant 2 : index
    %c0_11 = arith.constant 0 : index
    %23 = vector.load %arg5[%c2_10, %c0_11] : memref<8x16xf32, #tpu.memory_space<vmem>>, vector<1x16xf32>
    %24 = vector.broadcast %22 : vector<1x16xf32> to vector<32x16xf32>
    %25 = arith.subf %0, %24 : vector<32x16xf32>
    %26 = arith.mulf %25, %25 : vector<32x16xf32>
    %cst_12 = arith.constant 0.000000e+00 : f32
    %27 = vector.broadcast %cst_12 : f32 to vector<32x16xf32>
    %28 = arith.subf %27, %26 : vector<32x16xf32>
    %29 = vector.broadcast %23 : vector<1x16xf32> to vector<32x16xf32>
    %30 = arith.mulf %28, %29 : vector<32x16xf32>
    %31 = math.exp %30 : vector<32x16xf32>
    %32 = arith.maximumf %21, %31 : vector<32x16xf32>
    %c3 = arith.constant 3 : index
    %c0_13 = arith.constant 0 : index
    %33 = vector.load %arg4[%c3, %c0_13] : memref<8x16xf32, #tpu.memory_space<vmem>>, vector<1x16xf32>
    %c3_14 = arith.constant 3 : index
    %c0_15 = arith.constant 0 : index
    %34 = vector.load %arg5[%c3_14, %c0_15] : memref<8x16xf32, #tpu.memory_space<vmem>>, vector<1x16xf32>
    %35 = vector.broadcast %33 : vector<1x16xf32> to vector<32x16xf32>
    %36 = arith.subf %0, %35 : vector<32x16xf32>
    %37 = arith.mulf %36, %36 : vector<32x16xf32>
    %cst_16 = arith.constant 0.000000e+00 : f32
    %38 = vector.broadcast %cst_16 : f32 to vector<32x16xf32>
    %39 = arith.subf %38, %37 : vector<32x16xf32>
    %40 = vector.broadcast %34 : vector<1x16xf32> to vector<32x16xf32>
    %41 = arith.mulf %39, %40 : vector<32x16xf32>
    %42 = math.exp %41 : vector<32x16xf32>
    %43 = arith.maximumf %32, %42 : vector<32x16xf32>
    %c4 = arith.constant 4 : index
    %c0_17 = arith.constant 0 : index
    %44 = vector.load %arg4[%c4, %c0_17] : memref<8x16xf32, #tpu.memory_space<vmem>>, vector<1x16xf32>
    %c4_18 = arith.constant 4 : index
    %c0_19 = arith.constant 0 : index
    %45 = vector.load %arg5[%c4_18, %c0_19] : memref<8x16xf32, #tpu.memory_space<vmem>>, vector<1x16xf32>
    %46 = vector.broadcast %44 : vector<1x16xf32> to vector<32x16xf32>
    %47 = arith.subf %0, %46 : vector<32x16xf32>
    %48 = arith.mulf %47, %47 : vector<32x16xf32>
    %cst_20 = arith.constant 0.000000e+00 : f32
    %49 = vector.broadcast %cst_20 : f32 to vector<32x16xf32>
    %50 = arith.subf %49, %48 : vector<32x16xf32>
    %51 = vector.broadcast %45 : vector<1x16xf32> to vector<32x16xf32>
    %52 = arith.mulf %50, %51 : vector<32x16xf32>
    %53 = math.exp %52 : vector<32x16xf32>
    %54 = arith.maximumf %43, %53 : vector<32x16xf32>
    %c5 = arith.constant 5 : index
    %c0_21 = arith.constant 0 : index
    %55 = vector.load %arg4[%c5, %c0_21] : memref<8x16xf32, #tpu.memory_space<vmem>>, vector<1x16xf32>
    %c5_22 = arith.constant 5 : index
    %c0_23 = arith.constant 0 : index
    %56 = vector.load %arg5[%c5_22, %c0_23] : memref<8x16xf32, #tpu.memory_space<vmem>>, vector<1x16xf32>
    %57 = vector.broadcast %55 : vector<1x16xf32> to vector<32x16xf32>
    %58 = arith.subf %0, %57 : vector<32x16xf32>
    %59 = arith.mulf %58, %58 : vector<32x16xf32>
    %cst_24 = arith.constant 0.000000e+00 : f32
    %60 = vector.broadcast %cst_24 : f32 to vector<32x16xf32>
    %61 = arith.subf %60, %59 : vector<32x16xf32>
    %62 = vector.broadcast %56 : vector<1x16xf32> to vector<32x16xf32>
    %63 = arith.mulf %61, %62 : vector<32x16xf32>
    %64 = math.exp %63 : vector<32x16xf32>
    %65 = arith.maximumf %54, %64 : vector<32x16xf32>
    %c6 = arith.constant 6 : index
    %c0_25 = arith.constant 0 : index
    %66 = vector.load %arg4[%c6, %c0_25] : memref<8x16xf32, #tpu.memory_space<vmem>>, vector<1x16xf32>
    %c6_26 = arith.constant 6 : index
    %c0_27 = arith.constant 0 : index
    %67 = vector.load %arg5[%c6_26, %c0_27] : memref<8x16xf32, #tpu.memory_space<vmem>>, vector<1x16xf32>
    %68 = vector.broadcast %66 : vector<1x16xf32> to vector<32x16xf32>
    %69 = arith.subf %0, %68 : vector<32x16xf32>
    %70 = arith.mulf %69, %69 : vector<32x16xf32>
    %cst_28 = arith.constant 0.000000e+00 : f32
    %71 = vector.broadcast %cst_28 : f32 to vector<32x16xf32>
    %72 = arith.subf %71, %70 : vector<32x16xf32>
    %73 = vector.broadcast %67 : vector<1x16xf32> to vector<32x16xf32>
    %74 = arith.mulf %72, %73 : vector<32x16xf32>
    %75 = math.exp %74 : vector<32x16xf32>
    %76 = arith.maximumf %65, %75 : vector<32x16xf32>
    %c7 = arith.constant 7 : index
    %c0_29 = arith.constant 0 : index
    %77 = vector.load %arg4[%c7, %c0_29] : memref<8x16xf32, #tpu.memory_space<vmem>>, vector<1x16xf32>
    %c7_30 = arith.constant 7 : index
    %c0_31 = arith.constant 0 : index
    %78 = vector.load %arg5[%c7_30, %c0_31] : memref<8x16xf32, #tpu.memory_space<vmem>>, vector<1x16xf32>
    %79 = vector.broadcast %77 : vector<1x16xf32> to vector<32x16xf32>
    %80 = arith.subf %0, %79 : vector<32x16xf32>
    %81 = arith.mulf %80, %80 : vector<32x16xf32>
    %cst_32 = arith.constant 0.000000e+00 : f32
    %82 = vector.broadcast %cst_32 : f32 to vector<32x16xf32>
    %83 = arith.subf %82, %81 : vector<32x16xf32>
    %84 = vector.broadcast %78 : vector<1x16xf32> to vector<32x16xf32>
    %85 = arith.mulf %83, %84 : vector<32x16xf32>
    %86 = math.exp %85 : vector<32x16xf32>
    %87 = arith.maximumf %76, %86 : vector<32x16xf32>
    %88 = arith.mulf %0, %87 : vector<32x16xf32>
    %89 = arith.truncf %88 : vector<32x16xf32> to vector<32x16xbf16>
    %c0_33 = arith.constant 0 : index
    %c0_34 = arith.constant 0 : index
    %90 = vector.load %arg6[%c0_33, %c0_34] : memref<16x32xbf16, #tpu.memory_space<vmem>>, vector<16x32xbf16>
    %cst_35 = arith.constant dense<0.000000e+00> : vector<32x32xf32>
    %91 = tpu.matmul %89, %90, %cst_35 {dimension_numbers = #tpu.dot_dimension_numbers<[1], [0], [0], [1], [0, 0, 1, 1], [], []>} : vector<32x16xbf16>, vector<16x32xbf16>, vector<32x32xf32> -> vector<32x32xf32>
    %c0_36 = arith.constant 0 : index
    %c0_37 = arith.constant 0 : index
    %92 = vector.load %arg7[%c0_36, %c0_37] : memref<1x32xf32, #tpu.memory_space<vmem>>, vector<1x32xf32>
    %93 = vector.broadcast %92 : vector<1x32xf32> to vector<32x32xf32>
    %94 = arith.addf %91, %93 : vector<32x32xf32>
    %cst_38 = arith.constant 0.000000e+00 : f32
    %95 = vector.broadcast %cst_38 : f32 to vector<32x32xf32>
    %96 = arith.maximumf %94, %95 : vector<32x32xf32>
    %c0_39 = arith.constant 0 : index
    %c0_40 = arith.constant 0 : index
    %97 = vector.load %arg2[%c0_39, %c0_40] : memref<64x32xbf16, #tpu.memory_space<vmem>>, vector<64x32xbf16>
    %c0_41 = arith.constant 0 : index
    %c0_42 = arith.constant 0 : index
    %98 = vector.load %arg3[%c0_41, %c0_42] : memref<64x8xbf16, #tpu.memory_space<vmem>>, vector<64x8xbf16>
    %99 = arith.truncf %96 : vector<32x32xf32> to vector<32x32xbf16>
    %cst_43 = arith.constant dense<0.000000e+00> : vector<64x32xf32>
    %100 = tpu.matmul %97, %99, %cst_43 {dimension_numbers = #tpu.dot_dimension_numbers<[1], [0], [0], [1], [0, 0, 1, 1], [], []>} : vector<64x32xbf16>, vector<32x32xbf16>, vector<64x32xf32> -> vector<64x32xf32>
    %101 = arith.truncf %100 : vector<64x32xf32> to vector<64x32xbf16>
    %c0_44 = arith.constant 0 : index
    %c0_45 = arith.constant 0 : index
    %102 = vector.load %arg8[%c0_44, %c0_45] : memref<32x32xbf16, #tpu.memory_space<vmem>>, vector<32x32xbf16>
    %cst_46 = arith.constant dense<0.000000e+00> : vector<64x32xf32>
    %103 = tpu.matmul %101, %102, %cst_46 {dimension_numbers = #tpu.dot_dimension_numbers<[1], [0], [0], [1], [0, 0, 1, 1], [], []>} : vector<64x32xbf16>, vector<32x32xbf16>, vector<64x32xf32> -> vector<64x32xf32>
    %c0_47 = arith.constant 0 : index
    %c0_48 = arith.constant 0 : index
    %104 = vector.load %arg9[%c0_47, %c0_48] : memref<1x32xf32, #tpu.memory_space<vmem>>, vector<1x32xf32>
    %105 = vector.broadcast %104 : vector<1x32xf32> to vector<64x32xf32>
    %106 = arith.addf %103, %105 : vector<64x32xf32>
    %107 = arith.truncf %106 : vector<64x32xf32> to vector<64x32xbf16>
    %cst_49 = arith.constant dense<0.000000e+00> : vector<8x32xf32>
    %108 = tpu.matmul %98, %107, %cst_49 {dimension_numbers = #tpu.dot_dimension_numbers<[0], [0], [1], [1], [0, 1, 1, 1], [], []>} : vector<64x8xbf16>, vector<64x32xbf16>, vector<8x32xf32> -> vector<8x32xf32>
    %109 = arith.truncf %108 : vector<8x32xf32> to vector<8x32xbf16>
    %c0_50 = arith.constant 0 : index
    %c0_51 = arith.constant 0 : index
    %110 = vector.load %arg11[%c0_50, %c0_51] : memref<32x32xbf16, #tpu.memory_space<vmem>>, vector<32x32xbf16>
    %cst_52 = arith.constant dense<0.000000e+00> : vector<8x32xf32>
    %111 = tpu.matmul %109, %110, %cst_52 {dimension_numbers = #tpu.dot_dimension_numbers<[1], [0], [0], [1], [0, 0, 1, 1], [], []>} : vector<8x32xbf16>, vector<32x32xbf16>, vector<8x32xf32> -> vector<8x32xf32>
    %c0_53 = arith.constant 0 : index
    %c0_54 = arith.constant 0 : index
    %112 = vector.load %arg12[%c0_53, %c0_54] : memref<1x32xf32, #tpu.memory_space<vmem>>, vector<1x32xf32>
    %113 = vector.broadcast %112 : vector<1x32xf32> to vector<8x32xf32>
    %114 = arith.addf %111, %113 : vector<8x32xf32>
    %c0_55 = arith.constant 0 : index
    %c0_56 = arith.constant 0 : index
    %115 = vector.load %arg10[%c0_55, %c0_56] : memref<32x32xbf16, #tpu.memory_space<vmem>>, vector<32x32xbf16>
    %cst_57 = arith.constant dense<0.000000e+00> : vector<64x32xf32>
    %116 = tpu.matmul %101, %115, %cst_57 {dimension_numbers = #tpu.dot_dimension_numbers<[1], [0], [0], [1], [0, 0, 1, 1], [], []>} : vector<64x32xbf16>, vector<32x32xbf16>, vector<64x32xf32> -> vector<64x32xf32>
    %117 = arith.truncf %114 : vector<8x32xf32> to vector<8x32xbf16>
    %cst_58 = arith.constant dense<0.000000e+00> : vector<64x32xf32>
    %118 = tpu.matmul %98, %117, %cst_58 {dimension_numbers = #tpu.dot_dimension_numbers<[1], [0], [0], [1], [0, 0, 1, 1], [], []>} : vector<64x8xbf16>, vector<8x32xbf16>, vector<64x32xf32> -> vector<64x32xf32>
    %119 = arith.addf %116, %118 : vector<64x32xf32>
    %120 = arith.truncf %119 : vector<64x32xf32> to vector<64x32xbf16>
    %cst_59 = arith.constant dense<0.000000e+00> : vector<32x32xf32>
    %121 = tpu.matmul %97, %120, %cst_59 {dimension_numbers = #tpu.dot_dimension_numbers<[0], [0], [1], [1], [0, 1, 1, 1], [], []>} : vector<64x32xbf16>, vector<64x32xbf16>, vector<32x32xf32> -> vector<32x32xf32>
    %cst_60 = arith.constant 5.000000e-01 : f32
    %122 = vector.broadcast %cst_60 : f32 to vector<32x32xf32>
    %123 = arith.mulf %122, %121 : vector<32x32xf32>
    %cst_61 = arith.constant 5.000000e-01 : f32
    %124 = vector.broadcast %cst_61 : f32 to vector<32x32xf32>
    %125 = arith.mulf %124, %96 : vector<32x32xf32>
    %126 = arith.addf %123, %125 : vector<32x32xf32>
    %127 = arith.truncf %126 : vector<32x32xf32> to vector<32x32xbf16>
    %c0_62 = arith.constant 0 : index
    %c0_63 = arith.constant 0 : index
    %128 = vector.load %arg13[%c0_62, %c0_63] : memref<32x32xbf16, #tpu.memory_space<vmem>>, vector<32x32xbf16>
    %cst_64 = arith.constant dense<0.000000e+00> : vector<32x32xf32>
    %129 = tpu.matmul %127, %128, %cst_64 {dimension_numbers = #tpu.dot_dimension_numbers<[1], [0], [0], [1], [0, 0, 1, 1], [], []>} : vector<32x32xbf16>, vector<32x32xbf16>, vector<32x32xf32> -> vector<32x32xf32>
    %c0_65 = arith.constant 0 : index
    %c0_66 = arith.constant 0 : index
    %130 = vector.load %arg14[%c0_65, %c0_66] : memref<1x32xf32, #tpu.memory_space<vmem>>, vector<1x32xf32>
    %131 = vector.broadcast %130 : vector<1x32xf32> to vector<32x32xf32>
    %132 = arith.addf %129, %131 : vector<32x32xf32>
    %cst_67 = arith.constant 0.000000e+00 : f32
    %133 = vector.broadcast %cst_67 : f32 to vector<32x32xf32>
    %134 = arith.maximumf %132, %133 : vector<32x32xf32>
    %135 = arith.truncf %134 : vector<32x32xf32> to vector<32x32xbf16>
    %cst_68 = arith.constant dense<0.000000e+00> : vector<64x32xf32>
    %136 = tpu.matmul %97, %135, %cst_68 {dimension_numbers = #tpu.dot_dimension_numbers<[1], [0], [0], [1], [0, 0, 1, 1], [], []>} : vector<64x32xbf16>, vector<32x32xbf16>, vector<64x32xf32> -> vector<64x32xf32>
    %137 = arith.truncf %136 : vector<64x32xf32> to vector<64x32xbf16>
    %c0_69 = arith.constant 0 : index
    %c0_70 = arith.constant 0 : index
    %138 = vector.load %arg8[%c0_69, %c0_70] : memref<32x32xbf16, #tpu.memory_space<vmem>>, vector<32x32xbf16>
    %cst_71 = arith.constant dense<0.000000e+00> : vector<64x32xf32>
    %139 = tpu.matmul %137, %138, %cst_71 {dimension_numbers = #tpu.dot_dimension_numbers<[1], [0], [0], [1], [0, 0, 1, 1], [], []>} : vector<64x32xbf16>, vector<32x32xbf16>, vector<64x32xf32> -> vector<64x32xf32>
    %c0_72 = arith.constant 0 : index
    %c0_73 = arith.constant 0 : index
    %140 = vector.load %arg9[%c0_72, %c0_73] : memref<1x32xf32, #tpu.memory_space<vmem>>, vector<1x32xf32>
    %141 = vector.broadcast %140 : vector<1x32xf32> to vector<64x32xf32>
    %142 = arith.addf %139, %141 : vector<64x32xf32>
    %143 = arith.truncf %142 : vector<64x32xf32> to vector<64x32xbf16>
    %cst_74 = arith.constant dense<0.000000e+00> : vector<8x32xf32>
    %144 = tpu.matmul %98, %143, %cst_74 {dimension_numbers = #tpu.dot_dimension_numbers<[0], [0], [1], [1], [0, 1, 1, 1], [], []>} : vector<64x8xbf16>, vector<64x32xbf16>, vector<8x32xf32> -> vector<8x32xf32>
    %145 = arith.truncf %144 : vector<8x32xf32> to vector<8x32xbf16>
    %c0_75 = arith.constant 0 : index
    %c0_76 = arith.constant 0 : index
    %146 = vector.load %arg11[%c0_75, %c0_76] : memref<32x32xbf16, #tpu.memory_space<vmem>>, vector<32x32xbf16>
    %cst_77 = arith.constant dense<0.000000e+00> : vector<8x32xf32>
    %147 = tpu.matmul %145, %146, %cst_77 {dimension_numbers = #tpu.dot_dimension_numbers<[1], [0], [0], [1], [0, 0, 1, 1], [], []>} : vector<8x32xbf16>, vector<32x32xbf16>, vector<8x32xf32> -> vector<8x32xf32>
    %c0_78 = arith.constant 0 : index
    %c0_79 = arith.constant 0 : index
    %148 = vector.load %arg12[%c0_78, %c0_79] : memref<1x32xf32, #tpu.memory_space<vmem>>, vector<1x32xf32>
    %149 = vector.broadcast %148 : vector<1x32xf32> to vector<8x32xf32>
    %150 = arith.addf %147, %149 : vector<8x32xf32>
    %c0_80 = arith.constant 0 : index
    %c0_81 = arith.constant 0 : index
    %151 = vector.load %arg10[%c0_80, %c0_81] : memref<32x32xbf16, #tpu.memory_space<vmem>>, vector<32x32xbf16>
    %cst_82 = arith.constant dense<0.000000e+00> : vector<64x32xf32>
    %152 = tpu.matmul %137, %151, %cst_82 {dimension_numbers = #tpu.dot_dimension_numbers<[1], [0], [0], [1], [0, 0, 1, 1], [], []>} : vector<64x32xbf16>, vector<32x32xbf16>, vector<64x32xf32> -> vector<64x32xf32>
    %153 = arith.truncf %150 : vector<8x32xf32> to vector<8x32xbf16>
    %cst_83 = arith.constant dense<0.000000e+00> : vector<64x32xf32>
    %154 = tpu.matmul %98, %153, %cst_83 {dimension_numbers = #tpu.dot_dimension_numbers<[1], [0], [0], [1], [0, 0, 1, 1], [], []>} : vector<64x8xbf16>, vector<8x32xbf16>, vector<64x32xf32> -> vector<64x32xf32>
    %155 = arith.addf %152, %154 : vector<64x32xf32>
    %156 = arith.truncf %155 : vector<64x32xf32> to vector<64x32xbf16>
    %cst_84 = arith.constant dense<0.000000e+00> : vector<32x32xf32>
    %157 = tpu.matmul %97, %156, %cst_84 {dimension_numbers = #tpu.dot_dimension_numbers<[0], [0], [1], [1], [0, 1, 1, 1], [], []>} : vector<64x32xbf16>, vector<64x32xbf16>, vector<32x32xf32> -> vector<32x32xf32>
    %cst_85 = arith.constant 5.000000e-01 : f32
    %158 = vector.broadcast %cst_85 : f32 to vector<32x32xf32>
    %159 = arith.mulf %158, %157 : vector<32x32xf32>
    %cst_86 = arith.constant 5.000000e-01 : f32
    %160 = vector.broadcast %cst_86 : f32 to vector<32x32xf32>
    %161 = arith.mulf %160, %96 : vector<32x32xf32>
    %162 = arith.addf %159, %161 : vector<32x32xf32>
    %163 = arith.truncf %162 : vector<32x32xf32> to vector<32x32xbf16>
    %c0_87 = arith.constant 0 : index
    %c0_88 = arith.constant 0 : index
    %164 = vector.load %arg13[%c0_87, %c0_88] : memref<32x32xbf16, #tpu.memory_space<vmem>>, vector<32x32xbf16>
    %cst_89 = arith.constant dense<0.000000e+00> : vector<32x32xf32>
    %165 = tpu.matmul %163, %164, %cst_89 {dimension_numbers = #tpu.dot_dimension_numbers<[1], [0], [0], [1], [0, 0, 1, 1], [], []>} : vector<32x32xbf16>, vector<32x32xbf16>, vector<32x32xf32> -> vector<32x32xf32>
    %c0_90 = arith.constant 0 : index
    %c0_91 = arith.constant 0 : index
    %166 = vector.load %arg14[%c0_90, %c0_91] : memref<1x32xf32, #tpu.memory_space<vmem>>, vector<1x32xf32>
    %167 = vector.broadcast %166 : vector<1x32xf32> to vector<32x32xf32>
    %168 = arith.addf %165, %167 : vector<32x32xf32>
    %cst_92 = arith.constant 0.000000e+00 : f32
    %169 = vector.broadcast %cst_92 : f32 to vector<32x32xf32>
    %170 = arith.maximumf %168, %169 : vector<32x32xf32>
    %171 = arith.truncf %170 : vector<32x32xf32> to vector<32x32xbf16>
    %c0_93 = arith.constant 0 : index
    %c0_94 = arith.constant 0 : index
    %172 = vector.load %arg15[%c0_93, %c0_94] : memref<32x32xbf16, #tpu.memory_space<vmem>>, vector<32x32xbf16>
    %cst_95 = arith.constant dense<0.000000e+00> : vector<32x32xf32>
    %173 = tpu.matmul %171, %172, %cst_95 {dimension_numbers = #tpu.dot_dimension_numbers<[1], [0], [0], [1], [0, 0, 1, 1], [], []>} : vector<32x32xbf16>, vector<32x32xbf16>, vector<32x32xf32> -> vector<32x32xf32>
    %c0_96 = arith.constant 0 : index
    %c0_97 = arith.constant 0 : index
    %174 = vector.load %arg16[%c0_96, %c0_97] : memref<1x32xf32, #tpu.memory_space<vmem>>, vector<1x32xf32>
    %175 = vector.broadcast %174 : vector<1x32xf32> to vector<32x32xf32>
    %176 = arith.addf %173, %175 : vector<32x32xf32>
    %cst_98 = arith.constant 0.000000e+00 : f32
    %177 = vector.broadcast %cst_98 : f32 to vector<32x32xf32>
    %178 = arith.maximumf %176, %177 : vector<32x32xf32>
    %179 = arith.truncf %178 : vector<32x32xf32> to vector<32x32xbf16>
    %c0_99 = arith.constant 0 : index
    %c0_100 = arith.constant 0 : index
    %180 = vector.load %arg17[%c0_99, %c0_100] : memref<32x128xbf16, #tpu.memory_space<vmem>>, vector<32x128xbf16>
    %cst_101 = arith.constant dense<0.000000e+00> : vector<32x128xf32>
    %181 = tpu.matmul %179, %180, %cst_101 {dimension_numbers = #tpu.dot_dimension_numbers<[1], [0], [0], [1], [0, 0, 1, 1], [], []>} : vector<32x32xbf16>, vector<32x128xbf16>, vector<32x128xf32> -> vector<32x128xf32>
    %c0_102 = arith.constant 0 : index
    %c0_103 = arith.constant 0 : index
    %182 = vector.load %arg18[%c0_102, %c0_103] : memref<1x128xf32, #tpu.memory_space<vmem>>, vector<1x128xf32>
    %183 = vector.broadcast %182 : vector<1x128xf32> to vector<32x128xf32>
    %184 = arith.addf %181, %183 : vector<32x128xf32>
    %c0_104 = arith.constant 0 : index
    %c0_105 = arith.constant 0 : index
    %185 = vector.load %arg19[%c0_104, %c0_105] : memref<32x128xf32, #tpu.memory_space<vmem>>, vector<32x128xf32>
    tpu.vector_store %arg19[%c0_104, %c0_105], %184 {strides = array<i32>} : memref<32x128xf32, #tpu.memory_space<vmem>>, vector<32x128xf32>,
    return
  }
  func.func @transform_0(%arg0: i32) -> (i32, i32) {
    %c0_i32 = arith.constant 0 : i32
    %c0_i32_0 = arith.constant 0 : i32
    %c0_i32_1 = arith.constant 0 : i32
    return %c0_i32, %c0_i32_0 : i32, i32
  }
  func.func @transform_1(%arg0: i32) -> (i32, i32) {
    %c0_i32 = arith.constant 0 : i32
    %c0_i32_0 = arith.constant 0 : i32
    %c0_i32_1 = arith.constant 0 : i32
    return %c0_i32, %c0_i32_0 : i32, i32
  }
  func.func @transform_2(%arg0: i32) -> (i32, i32) {
    %c0_i32 = arith.constant 0 : i32
    %c0_i32_0 = arith.constant 0 : i32
    %c0_i32_1 = arith.constant 0 : i32
    return %c0_i32, %c0_i32_0 : i32, i32
  }
  func.func @transform_3(%arg0: i32) -> (i32, i32) {
    %c0_i32 = arith.constant 0 : i32
    %c0_i32_0 = arith.constant 0 : i32
    %c0_i32_1 = arith.constant 0 : i32
    return %c0_i32, %c0_i32_0 : i32, i32
  }
  func.func @transform_4(%arg0: i32) -> (i32, i32) {
    %c0_i32 = arith.constant 0 : i32
    %c0_i32_0 = arith.constant 0 : i32
    %c0_i32_1 = arith.constant 0 : i32
    return %c0_i32, %c0_i32_0 : i32, i32
  }
  func.func @transform_5(%arg0: i32) -> (i32, i32) {
    %c0_i32 = arith.constant 0 : i32
    %c0_i32_0 = arith.constant 0 : i32
    %c0_i32_1 = arith.constant 0 : i32
    return %c0_i32, %c0_i32_0 : i32, i32
  }
  func.func @transform_6(%arg0: i32) -> (i32, i32) {
    %c0_i32 = arith.constant 0 : i32
    %c0_i32_0 = arith.constant 0 : i32
    %c0_i32_1 = arith.constant 0 : i32
    return %c0_i32, %c0_i32_0 : i32, i32
  }
  func.func @transform_7(%arg0: i32) -> (i32, i32) {
    %c0_i32 = arith.constant 0 : i32
    %c0_i32_0 = arith.constant 0 : i32
    %c0_i32_1 = arith.constant 0 : i32
    return %c0_i32, %c0_i32_0 : i32, i32
  }
  func.func @transform_8(%arg0: i32) -> (i32, i32) {
    %c0_i32 = arith.constant 0 : i32
    %c0_i32_0 = arith.constant 0 : i32
    %c0_i32_1 = arith.constant 0 : i32
    return %c0_i32, %c0_i32_0 : i32, i32
  }
  func.func @transform_9(%arg0: i32) -> (i32, i32) {
    %c0_i32 = arith.constant 0 : i32
    %c0_i32_0 = arith.constant 0 : i32
    %c0_i32_1 = arith.constant 0 : i32
    return %c0_i32, %c0_i32_0 : i32, i32
  }
  func.func @transform_10(%arg0: i32) -> (i32, i32) {
    %c0_i32 = arith.constant 0 : i32
    %c0_i32_0 = arith.constant 0 : i32
    %c0_i32_1 = arith.constant 0 : i32
    return %c0_i32, %c0_i32_0 : i32, i32
  }
  func.func @transform_11(%arg0: i32) -> (i32, i32) {
    %c0_i32 = arith.constant 0 : i32
    %c0_i32_0 = arith.constant 0 : i32
    %c0_i32_1 = arith.constant 0 : i32
    return %c0_i32, %c0_i32_0 : i32, i32
  }
  func.func @transform_12(%arg0: i32) -> (i32, i32) {
    %c0_i32 = arith.constant 0 : i32
    %c0_i32_0 = arith.constant 0 : i32
    %c0_i32_1 = arith.constant 0 : i32
    return %c0_i32, %c0_i32_0 : i32, i32
  }
  func.func @transform_13(%arg0: i32) -> (i32, i32) {
    %c0_i32 = arith.constant 0 : i32
    %c0_i32_0 = arith.constant 0 : i32
    %c0_i32_1 = arith.constant 0 : i32
    return %c0_i32, %c0_i32_0 : i32, i32
  }
  func.func @transform_14(%arg0: i32) -> (i32, i32) {
    %c0_i32 = arith.constant 0 : i32
    %c0_i32_0 = arith.constant 0 : i32
    %c0_i32_1 = arith.constant 0 : i32
    return %c0_i32, %c0_i32_0 : i32, i32
  }
  func.func @transform_15(%arg0: i32) -> (i32, i32) {
    %c0_i32 = arith.constant 0 : i32
    %c0_i32_0 = arith.constant 0 : i32
    %c0_i32_1 = arith.constant 0 : i32
    return %c0_i32, %c0_i32_0 : i32, i32
  }
  func.func @transform_16(%arg0: i32) -> (i32, i32) {
    %c0_i32 = arith.constant 0 : i32
    %c0_i32_0 = arith.constant 0 : i32
    %c0_i32_1 = arith.constant 0 : i32
    return %c0_i32, %c0_i32_0 : i32, i32
  }
  func.func @transform_17(%arg0: i32) -> (i32, i32) {
    %c0_i32 = arith.constant 0 : i32
    %c0_i32_0 = arith.constant 0 : i32
    %c0_i32_1 = arith.constant 0 : i32
    return %c0_i32, %c0_i32_0 : i32, i32
  }
  func.func @transform_18(%arg0: i32) -> (i32, i32) {
    %c0_i32 = arith.constant 0 : i32
    %c0_i32_0 = arith.constant 0 : i32
    %c0_i32_1 = arith.constant 0 : i32
    return %c0_i32, %c0_i32_0 : i32, i32
  }
}

</mosaic_0001>

<bundles_post_ra>
// kernel: tpu_custom_call.1
= control target key start
LH: loop header
LB: loop body
LE: loop exit
PB: predicated region body
PF: predicated region fallthrough
CT: control target
= control target key end

     0   :  { %s3012_s0 = inlined_call_operand.vmem [shape: f32[32,16], index: 0, kind: input, shape index: {}]   ;;  %s3013_s1 = inlined_call_operand.vmem [shape: bf16[64,32], index: 1, kind: input, shape index: {}]   ;;  %s3014_s2 = inlined_call_operand.vmem [shape: bf16[64,8], index: 2, kind: input, shape index: {}]   ;;  %s3015_s3 = inlined_call_operand.vmem [shape: f32[8,16], index: 3, kind: input, shape index: {}]   ;;  %s3016_s4 = inlined_call_operand.vmem [shape: f32[8,16], index: 4, kind: input, shape index: {}]   ;;  %s3017_s5 = inlined_call_operand.vmem [shape: bf16[16,32], index: 5, kind: input, shape index: {}]   ;;  %s3018_s6 = inlined_call_operand.vmem [shape: f32[1,32], index: 6, kind: input, shape index: {}]   ;;  %s3019_s7 = inlined_call_operand.vmem [shape: bf16[32,32], index: 7, kind: input, shape index: {}]   ;;  %s3020_s8 = inlined_call_operand.vmem [shape: f32[1,32], index: 8, kind: input, shape index: {}]   ;;  %s3021_s9 = inlined_call_operand.vmem [shape: bf16[32,32], index: 9, kind: input, shape index: {}]   ;;  %s3022_s10 = inlined_call_operand.vmem [shape: bf16[32,32], index: 10, kind: input, shape index: {}]   ;;  %s3023_s11 = inlined_call_operand.vmem [shape: f32[1,32], index: 11, kind: input, shape index: {}]   ;;  %s3024_s12 = inlined_call_operand.vmem [shape: bf16[32,32], index: 12, kind: input, shape index: {}]   ;;  %s3025_s13 = inlined_call_operand.vmem [shape: f32[1,32], index: 13, kind: input, shape index: {}]   ;;  %s3026_s14 = inlined_call_operand.vmem [shape: bf16[32,32], index: 14, kind: input, shape index: {}]   ;;  %s3027_s15 = inlined_call_operand.vmem [shape: f32[1,32], index: 15, kind: input, shape index: {}]   ;;  %s3028_s16 = inlined_call_operand.vmem [shape: bf16[32,128], index: 16, kind: input, shape index: {}]   ;;  %s3029_s17 = inlined_call_operand.vmem [shape: f32[1,128], index: 17, kind: input, shape index: {}]   ;;  %s3030_s18 = inlined_call_operand.hbm [shape: f32[32,128], index: 18, kind: output, shape index: {}]  }
   0x1   :  { %3034 = sst [smem:[#allocation5_spill]] %s3012_s0 }
   0x2   :  { %3035 = sst [smem:[#allocation6_spill]] %s3013_s1 }
   0x3   :  { %3036 = sst [smem:[#allocation7_spill]] %s3014_s2 }
   0x4   :  { %v2240_v0 = vld [vmem:[%s3017_s5] sm:$0xff]   ;;  %s3037_s0 = sld [smem:[#allocation5_spill]] }
   0x5   :  { %v2465_v3 = vld [vmem:[%s3015_s3] ss:$0 sm:$0xff]  ;;  %2022 = vmatprep.subr.bf16.mxu0 %v2240_v0  ;;  %v2474_v6 = vld [vmem:[%s3015_s3 + $0x1] ss:$0 sm:$0xff]  ;;  %v2483_v9 = vld [vmem:[%s3015_s3 + $0x2] ss:$0 sm:$0xff] }
   0x6   :  { %2023 = vmatpush3.bf16.msra.mxu0 %v2240_v0  ;;  %v2488_v10 = vld [vmem:[%s3015_s3 + $0x3] ss:$0 sm:$0xff]  ;;  %v2497_v15 = vld [vmem:[%s3016_s4] ss:$0 sm:$0xff]  ;;  %v2506_v22 = vld [vmem:[%s3016_s4 + $0x1] ss:$0 sm:$0xff] }
   0x7   :  { %v2511_v23 = vld [vmem:[%s3016_s4 + $0x2] ss:$0 sm:$0xff]  ;;  %v2516_v28 = vld [vmem:[%s3016_s4 + $0x3] ss:$0 sm:$0xff]  ;;  %v2521_v31 = vld [vmem:[%s3015_s3 + $0x4] ss:$0 sm:$0xff] }
   0x8   :  { %v2530_v40 = vld [vmem:[%s3015_s3 + $0x5] ss:$0 sm:$0xff]  ;;  %v2537_v45 = vld [vmem:[%s3015_s3 + $0x6] ss:$0 sm:$0xff]  ;;  %v2546_v55 = vld [vmem:[%s3016_s4 + $0x4] ss:$0 sm:$0xff] }
   0x9   :  { %v2557_v61 = vld [vmem:[%s3016_s4 + $0x5] ss:$0 sm:$0xff]  ;;  %v2566_v0 = vld [vmem:[%s3015_s3 + $0x7] ss:$0 sm:$0xff] }
   0xa   :  { %v2455_v1 = vld [vmem:[%s3037_s0] sm:$0xff]  ;;  %v2460_v2 = vld [vmem:[%s3037_s0 + $0x8] sm:$0xff] }
   0xb   :  { %v71_v4 = vsub.f32 %v2455_v1, %v2465_v3  ;;  %v72_v5 = vsub.f32 %v2460_v2, %v2465_v3  ;;  %v105_v7 = vsub.f32 %v2455_v1, %v2474_v6  ;;  %v106_v8 = vsub.f32 %v2460_v2, %v2474_v6 }
   0xc   :  { %v143_v13 = vsub.f32 %v2455_v1, %v2483_v9  ;;  %v144_v14 = vsub.f32 %v2460_v2, %v2483_v9  ;;  %v181_v18 = vsub.f32 %v2455_v1, %v2488_v10  ;;  %v182_v19 = vsub.f32 %v2460_v2, %v2488_v10 }
   0xd   :  { %v75_v11 = vmul.f32 %v71_v4, %v71_v4  ;;  %v76_v12 = vmul.f32 %v72_v5, %v72_v5  ;;  %v109_v16 = vmul.f32 %v105_v7, %v105_v7  ;;  %v110_v17 = vmul.f32 %v106_v8, %v106_v8  ;;  %v2571_v8 = vld [vmem:[%s3016_s4 + $0x6] ss:$0 sm:$0xff] }
   0xe   :  { %v147_v24 = vmul.f32 %v143_v13, %v143_v13  ;;  %v148_v25 = vmul.f32 %v144_v14, %v144_v14  ;;  %v185_v29 = vmul.f32 %v181_v18, %v181_v18  ;;  %v186_v30 = vmul.f32 %v182_v19, %v182_v19 }
   0xf   :  { %v79_v20 = vsub.f32 0.0, %v75_v11  ;;  %v80_v21 = vsub.f32 0.0, %v76_v12  ;;  %v113_v26 = vsub.f32 0.0, %v109_v16  ;;  %v114_v27 = vsub.f32 0.0, %v110_v17 }
  0x10   :  { %v151_v34 = vsub.f32 0.0, %v147_v24  ;;  %v152_v35 = vsub.f32 0.0, %v148_v25  ;;  %v189_v38 = vsub.f32 0.0, %v185_v29  ;;  %v190_v39 = vsub.f32 0.0, %v186_v30  ;;  %v2583_v24 = vld [vmem:[%s3037_s0 + $0x18] sm:$0xff] }
  0x11   :  { %v87_v32 = vmul.f32 %v2497_v15, %v79_v20  ;;  %v88_v33 = vmul.f32 %v2497_v15, %v80_v21  ;;  %v121_v36 = vmul.f32 %v2506_v22, %v113_v26  ;;  %v122_v37 = vmul.f32 %v2506_v22, %v114_v27  ;;  %v2578_v21 = vld [vmem:[%s3037_s0 + $0x10] sm:$0xff] }
  0x12   :  { %v159_v43 = vmul.f32 %v2511_v23, %v151_v34  ;;  %v160_v44 = vmul.f32 %v2511_v23, %v152_v35  ;;  %v197_v48 = vmul.f32 %v2516_v28, %v189_v38  ;;  %v198_v49 = vmul.f32 %v2516_v28, %v190_v39  ;;  %v2594_v34 = vld [vmem:[%s3016_s4 + $0x7] ss:$0 sm:$0xff] }
  0x13   :  { %v91_v41 = vmul.f32 1.442695, %v87_v32  ;;  %v93_v42 = vmul.f32 1.442695, %v88_v33  ;;  %v125_v46 = vmul.f32 1.442695, %v121_v36  ;;  %v219_v52 = vsub.f32 %v2455_v1, %v2521_v31 }
  0x14   :  { %v127_v47 = vmul.f32 1.442695, %v122_v37  ;;  %v163_v50 = vmul.f32 1.442695, %v159_v43  ;;  %v165_v51 = vmul.f32 1.442695, %v160_v44  ;;  %v220_v56 = vsub.f32 %v2460_v2, %v2521_v31 }
  0x15   :  { %2261 = vpow2.f32 %v91_v41  ;;  %v201_v53 = vmul.f32 1.442695, %v197_v48  ;;  %v203_v54 = vmul.f32 1.442695, %v198_v49  ;;  %v223_v57 = vmul.f32 %v219_v52, %v219_v52 }
  0x16   :  { %2263 = vpow2.f32 %v93_v42  ;;  %v257_v58 = vsub.f32 %v2455_v1, %v2530_v40  ;;  %v258_v59 = vsub.f32 %v2460_v2, %v2530_v40  ;;  %v224_v60 = vmul.f32 %v220_v56, %v220_v56 }
  0x17   :  { %2265 = vpow2.f32 %v125_v46  ;;  %v295_v62 = vsub.f32 %v2455_v1, %v2537_v45  ;;  %v296_v63 = vsub.f32 %v2460_v2, %v2537_v45  ;;  %v227_v4 = vsub.f32 0.0, %v223_v57 }
  0x18   :  { %2267 = vpow2.f32 %v127_v47  ;;  %v261_v5 = vmul.f32 %v257_v58, %v257_v58  ;;  %v262_v7 = vmul.f32 %v258_v59, %v258_v59  ;;  %v228_v11 = vsub.f32 0.0, %v224_v60 }
  0x19   :  { %2269 = vpow2.f32 %v163_v50  ;;  %v299_v12 = vmul.f32 %v295_v62, %v295_v62  ;;  %v300_v13 = vmul.f32 %v296_v63, %v296_v63  ;;  %v235_v14 = vmul.f32 %v2546_v55, %v227_v4 }
  0x1a   :  { %2271 = vpow2.f32 %v165_v51  ;;  %v265_v16 = vsub.f32 0.0, %v261_v5  ;;  %v266_v17 = vsub.f32 0.0, %v262_v7  ;;  %v236_v18 = vmul.f32 %v2546_v55, %v228_v11 }
  0x1b   :  { %2273 = vpow2.f32 %v201_v53  ;;  %v303_v19 = vsub.f32 0.0, %v299_v12  ;;  %v304_v20 = vsub.f32 0.0, %v300_v13  ;;  %v239_v25 = vmul.f32 1.442695, %v235_v14 }
  0x1c   :  { %2275 = vpow2.f32 %v203_v54  ;;  %v273_v26 = vmul.f32 %v2557_v61, %v265_v16  ;;  %v274_v27 = vmul.f32 %v2557_v61, %v266_v17  ;;  %v333_v29 = vsub.f32 %v2455_v1, %v2566_v0 }
  0x1d   :  { %v241_v30 = vmul.f32 1.442695, %v236_v18  ;;  %v311_v32 = vmul.f32 %v2571_v8, %v303_v19  ;;  %v312_v33 = vmul.f32 %v2571_v8, %v304_v20  ;;  %v334_v35 = vsub.f32 %v2460_v2, %v2566_v0 }
  0x1e   :  { %2277 = vpow2.f32 %v239_v25  ;;  %v277_v37 = vmul.f32 1.442695, %v273_v26  ;;  %v279_v38 = vmul.f32 1.442695, %v274_v27  ;;  %v337_v39 = vmul.f32 %v333_v29, %v333_v29 }
  0x1f   :  { %v2262_v36 = vpop.eup %2261  ;;  %2279 = vpow2.f32 %v241_v30  ;;  %v315_v42 = vmul.f32 1.442695, %v311_v32  ;;  %v317_v43 = vmul.f32 1.442695, %v312_v33  ;;  %v338_v44 = vmul.f32 %v334_v35, %v334_v35 }
  0x20   :  { %v2264_v41 = vpop.eup %2263  ;;  %2281 = vpow2.f32 %v277_v37  ;;  %v341_v47 = vsub.f32 0.0, %v337_v39  ;;  %v73_v48 = vsub.f32 %v2578_v21, %v2465_v3  ;;  %v74_v49 = vsub.f32 %v2583_v24, %v2465_v3 }
  0x21   :  { %v2266_v46 = vpop.eup %2265  ;;  %2283 = vpow2.f32 %v279_v38  ;;  %v342_v52 = vsub.f32 0.0, %v338_v44  ;;  %v107_v53 = vsub.f32 %v2578_v21, %v2474_v6  ;;  %v108_v11 = vsub.f32 %v2583_v24, %v2474_v6 }
  0x22   :  { %v2268_v50 = vpop.eup %2267  ;;  %v133_v51 = vmax.f32 %v2262_v36, %v2266_v46  ;;  %2285 = vpow2.f32 %v315_v42  ;;  %v349_v57 = vmul.f32 %v2594_v34, %v341_v47  ;;  %v77_v58 = vmul.f32 %v73_v48, %v73_v48 }
  0x23   :  { %v2270_v54 = vpop.eup %2269  ;;  %v134_v56 = vmax.f32 %v2264_v41, %v2268_v50  ;;  %2287 = vpow2.f32 %v317_v43  ;;  %v350_v62 = vmul.f32 %v2594_v34, %v342_v52  ;;  %v78_v63 = vmul.f32 %v74_v49, %v74_v49 }
  0x24   :  { %v2272_v59 = vpop.eup %2271  ;;  %v171_v60 = vmax.f32 %v133_v51, %v2270_v54  ;;  %v353_v5 = vmul.f32 1.442695, %v349_v57  ;;  %v81_v7 = vsub.f32 0.0, %v77_v58  ;;  %v111_v17 = vmul.f32 %v107_v53, %v107_v53 }
  0x25   :  { %v2274_v3 = vpop.eup %2273  ;;  %v172_v4 = vmax.f32 %v134_v56, %v2272_v59  ;;  %v355_v14 = vmul.f32 1.442695, %v350_v62  ;;  %v82_v16 = vsub.f32 0.0, %v78_v63  ;;  %v112_v20 = vmul.f32 %v108_v11, %v108_v11 }
  0x26   :  { %v2276_v12 = vpop.eup %2275  ;;  %v209_v13 = vmax.f32 %v171_v60, %v2274_v3  ;;  %2289 = vpow2.f32 %v353_v5  ;;  %v89_v19 = vmul.f32 %v2497_v15, %v81_v7 }
  0x27   :  { %v210_v18 = vmax.f32 %v172_v4, %v2276_v12 }
  0x28   :  { %23 = vsyncpa [#allocation3], 0  ;;  %2291 = vpow2.f32 %v355_v14  ;;  %v90_v25 = vmul.f32 %v2497_v15, %v82_v16  ;;  %v115_v26 = vsub.f32 0.0, %v111_v17  ;;  %v145_v27 = vsub.f32 %v2578_v21, %v2483_v9  ;;  %v2278_v29 = vpop.eup %2277  ;;  %s3038_s23 = sld [smem:[#allocation6_spill]]  ;;  %s3039_s22 = sld [smem:[#allocation7_spill]] }
  0x29   :  { %v95_v6 = vmul.f32 1.442695, %v89_v19  ;;  %v116_v30 = vsub.f32 0.0, %v112_v20  ;;  %v146_v32 = vsub.f32 %v2583_v24, %v2483_v9  ;;  %v183_v33 = vsub.f32 %v2578_v21, %v2488_v10  ;;  %v2280_v35 = vpop.eup %2279  ;;  %s2351_s26 = smov [#allocation2]  }
  0x2a   :  { %v247_v36 = vmax.f32 %v209_v13, %v2278_v29  ;;  %v97_v37 = vmul.f32 1.442695, %v90_v25  ;;  %v123_v38 = vmul.f32 %v2506_v22, %v115_v26  ;;  %v149_v39 = vmul.f32 %v145_v27, %v145_v27  ;;  %v2282_v15 = vpop.eup %2281  ;;  %s1825_s27 = sshll.u32 %s2351_s26, 4  ;;  %s1826_s27 = int_to_ptr.vmem [resolvable:$true] %s1825_s27 }
  0x2b   :  { %v248_v41 = vmax.f32 %v210_v18, %v2280_v35  ;;  %2293 = vpow2.f32 %v95_v6  ;;  %v124_v42 = vmul.f32 %v2506_v22, %v116_v30  ;;  %v150_v43 = vmul.f32 %v146_v32, %v146_v32  ;;  %v2284_v44 = vpop.eup %2283  ;;  %s2325_s28 = scalar_lea.vmem %s1826_s27, 512  ;;  %p2330_p1 = scmp.lt.s32.totalorder %s1826_s27, %s1826_s27 }
  0x2c   :  { %v285_v46 = vmax.f32 %v247_v36, %v2282_v15  ;;  %2295 = vpow2.f32 %v97_v37  ;;  %v129_v47 = vmul.f32 1.442695, %v123_v38  ;;  %v153_v9 = vsub.f32 0.0, %v149_v39  ;;  %v2286_v48 = vpop.eup %2285  ;;  %p2326_p0 = scmp.ne.s32.totalorder %s1826_s27, %s2325_s28  ;;  %p2331_p2 = scmp.lt.s32.totalorder %s2325_s28, %s2325_s28 }
  0x2d   :  { %v286_v49 = vmax.f32 %v248_v41, %v2284_v44  ;;  %v131_v50 = vmul.f32 1.442695, %v124_v42  ;;  %v154_v51 = vsub.f32 0.0, %v150_v43  ;;  %v184_v52 = vsub.f32 %v2583_v24, %v2488_v10  ;;  %v2288_v53 = vpop.eup %2287 }
  0x2e   :  { %v323_v54 = vmax.f32 %v285_v46, %v2286_v48  ;;  %vm386_vm0 = vcmask 130048   ;;  %2297 = vpow2.f32 %v129_v47  ;;  %v161_v56 = vmul.f32 %v2511_v23, %v153_v9  ;;  %p2332_p3 = por %p2331_p2, %p2330_p1 }
  0x2f   :  { %v187_v22 = vmul.f32 %v183_v33, %v183_v33  ;;  %v324_v57 = vmax.f32 %v286_v49, %v2288_v53  ;;  %2299 = vpow2.f32 %v131_v50  ;;  %v162_v58 = vmul.f32 %v2511_v23, %v154_v51 }
  0x30   :  { %v188_v59 = vmul.f32 %v184_v52, %v184_v52  ;;  %v167_v60 = vmul.f32 1.442695, %v161_v56  ;;  %v221_v63 = vsub.f32 %v2578_v21, %v2521_v31  ;;  %v222_v10 = vsub.f32 %v2583_v24, %v2521_v31  ;;  %v2290_v3 = vpop.eup %2289  ;;  %p2333_p4 = pnand %p2332_p3, %p2326_p0 }
  0x31   :  { %v191_v62 = vsub.f32 0.0, %v187_v22  ;;  %v169_v4 = vmul.f32 1.442695, %v162_v58  ;;  %v259_v7 = vsub.f32 %v2578_v21, %v2530_v40  ;;  %v260_v11 = vsub.f32 %v2583_v24, %v2530_v40 }
  0x32   :  { %v192_v5 = vsub.f32 0.0, %v188_v59  ;;  %v2292_v12 = vpop.eup %2291  ;;  %v361_v23 = vmax.f32 %v323_v54, %v2290_v3  ;;  %2301 = vpow2.f32 %v167_v60  ;;  %v225_v14 = vmul.f32 %v221_v63, %v221_v63 }
  0x33   :  { %v199_v13 = vmul.f32 %v2516_v28, %v191_v62  ;;  %v362_v16 = vmax.f32 %v324_v57, %v2292_v12  ;;  %2303 = vpow2.f32 %v169_v4  ;;  %v226_v31 = vmul.f32 %v222_v10, %v222_v10 }
  0x34   :  { %v200_v17 = vmul.f32 %v2516_v28, %v192_v5  ;;  %v365_v18 = vmul.f32 %v361_v23, %v2455_v1  ;;  %v229_v20 = vsub.f32 0.0, %v225_v14  ;;  %v263_v25 = vmul.f32 %v259_v7, %v259_v7 }
  0x35   :  { %v205_v19 = vmul.f32 1.442695, %v199_v13  ;;  %v2294_v26 = vpop.eup %2293  ;;  %v366_v27 = vmul.f32 %v362_v16, %v2460_v2  ;;  %v230_v29 = vsub.f32 0.0, %v226_v31  ;;  %v264_v6 = vmul.f32 %v260_v11, %v260_v11 }
  0x36   :  { %v207_v40 = vmul.f32 1.442695, %v200_v17  ;;  %v2296_v30 = vpop.eup %2295  ;;  %v237_v32 = vmul.f32 %v2546_v55, %v229_v20  ;;  %v267_v33 = vsub.f32 0.0, %v263_v25  ;;  %v297_v28 = vsub.f32 %v2578_v21, %v2537_v45 }
  0x37   :  { %2305 = vpow2.f32 %v205_v19  ;;  %v369_v35 = vpack.c.bf16 %v366_v27, %v365_v18  ;;  %v238_v1 = vmul.f32 %v2546_v55, %v230_v29  ;;  %v268_v36 = vsub.f32 0.0, %v264_v6 }
  0x38   :  { %2307 = vpow2.f32 %v207_v40  ;;  %v2298_v37 = vpop.eup %2297  ;;  %v243_v38 = vmul.f32 1.442695, %v237_v32  ;;  %v275_v2 = vmul.f32 %v2557_v61, %v267_v33  ;;  %v298_v39 = vsub.f32 %v2583_v24, %v2537_v45  ;;  %v2657_v32 = vld [vmem:[%s3038_s23] sm:$0xff]  }
  0x39   :  { %v301_v15 = vmul.f32 %v297_v28, %v297_v28  ;;  %v2300_v41 = vpop.eup %2299  ;;  %2024 = vmatprep.mubr.msk.bf16.mxu0 %vm386_vm0, %v369_v35  ;;  %v135_v42 = vmax.f32 %v2294_v26, %v2298_v37  ;;  %v245_v43 = vmul.f32 1.442695, %v238_v1  ;;  %v276_v44 = vmul.f32 %v2557_v61, %v268_v36  ;;  %993 = vxpose.xlu1.c.b16.start [1/4] (short) (narrow) %v2657_v32, 32  ;;  %v2677_v33 = vld [vmem:[%s3019_s7] sm:$0xff]   ;;  %v2682_v28 = vld [vmem:[%s3038_s23 + $0x18] sm:$0xff]  }
  0x3a   :  { %v335_v46 = vsub.f32 %v2578_v21, %v2566_v0  ;;  %v136_v55 = vmax.f32 %v2296_v30, %v2300_v41  ;;  %2309 = vpow2.f32 %v243_v38  ;;  %v281_v47 = vmul.f32 1.442695, %v275_v2  ;;  %2040 = vmatprep.subr.bf16.mxu0 %v2677_v33  ;;  %v1852_v35 = vld [vmem:[%s3018_s6] ss:$0 sm:$0xff] }
  0x3b   :  { %v302_v9 = vmul.f32 %v298_v39, %v298_v39  ;;  %2311 = vpow2.f32 %v245_v43  ;;  %v283_v48 = vmul.f32 1.442695, %v276_v44  ;;  %v305_v49 = vsub.f32 0.0, %v301_v15 }
  0x3c   :  { %v336_v45 = vsub.f32 %v2583_v24, %v2566_v0  ;;  %v2302_v50 = vpop.eup %2301  ;;  %2313 = vpow2.f32 %v281_v47  ;;  %v339_v52 = vmul.f32 %v335_v46, %v335_v46  ;;  %vm484_vm1 = vcmask 261120  }
  0x3d   :  { %v306_v51 = vsub.f32 0.0, %v302_v9  ;;  %v2304_v53 = vpop.eup %2303  ;;  %v173_v54 = vmax.f32 %v135_v42, %v2302_v50  ;;  %2315 = vpow2.f32 %v283_v48  ;;  %v313_v61 = vmul.f32 %v2571_v8, %v305_v49  ;;  %2032 = vmatprep.mubr.msk.bf16.mxu1 %vm484_vm1, %v2657_v32  ;;  %v2719_v9 = vld [vmem:[%s3019_s7 + $0x8] sm:$0xff]   ;;  %v2726_v48 = vld [vmem:[%s3039_s22] sm:$0xff]   ;;  %v2744_v50 = vld [vmem:[%s3039_s22 + $0x18] sm:$0xff]  }
  0x3e   :  { %v340_v56 = vmul.f32 %v336_v45, %v336_v45  ;;  %v174_v22 = vmax.f32 %v136_v55, %v2304_v53  ;;  %v343_v58 = vsub.f32 0.0, %v339_v52  ;;  %694 = vxpose.xlu0.c.b16.start [1/4] (short) (narrow) %v2726_v48, 16  ;;  %v2732_v49 = vld [vmem:[%s3039_s22 + $0x8] sm:$0xff]   ;;  %v2738_v45 = vld [vmem:[%s3039_s22 + $0x10] sm:$0xff]   ;;  %vm2350_vm2 = vmmov 0  }
  0x3f   :  { %v314_v57 = vmul.f32 %v2571_v8, %v306_v51  ;;  %v319_v59 = vmul.f32 1.442695, %v313_v61  ;;  %vm710_vm3 = vcmask 523264   ;;  %vm826_vm4 = vcmask 64512  }
  0x40   :  { %v344_v60 = vsub.f32 0.0, %v340_v56  ;;  %v351_v0 = vmul.f32 %v2594_v34, %v343_v58  ;;  %vm839_vm5 = vcmask 1043456  }
  0x41   :  { %v2306_v62 = vpop.eup %2305  ;;  %v321_v63 = vmul.f32 1.442695, %v314_v57  ;;  %2317 = vpow2.f32 %v319_v59 }
  0x42   :  { %v2308_v10 = vpop.eup %2307  ;;  %v211_v3 = vmax.f32 %v173_v54, %v2306_v62  ;;  %v352_v4 = vmul.f32 %v2594_v34, %v344_v60  ;;  %v357_v7 = vmul.f32 1.442695, %v351_v0  ;;  %695 = vxpose.xlu0.c.b16.cont [2/4] (short) (narrow) %v2732_v49, 16  ;;  %v2772_v0 = vld [vmem:[%s3022_s10] sm:$0xff]  }
  0x43   :  { %v212_v5 = vmax.f32 %v174_v22, %v2308_v10  ;;  %2319 = vpow2.f32 %v321_v63  ;;  %v2349_v63 = vmov 0.0  }
  0x44   :  { %v359_v11 = vmul.f32 1.442695, %v352_v4  ;;  %v2310_v12 = vpop.eup %2309  ;;  %2321 = vpow2.f32 %v357_v7 }
  0x45   :  { %v2312_v23 = vpop.eup %2311  ;;  %v249_v8 = vmax.f32 %v211_v3, %v2310_v12  ;;  %v2779_v3 = vld [vmem:[%s3020_s8] ss:$0 sm:$0xff] }
  0x46   :  { %2323 = vpow2.f32 %v359_v11  ;;  %v2314_v13 = vpop.eup %2313  ;;  %v250_v14 = vmax.f32 %v212_v5, %v2312_v23  ;;  %696 = vxpose.xlu0.c.b16.cont [3/4] (short) (narrow) %v2738_v45, 16 }
  0x47   :  { %v2316_v16 = vpop.eup %2315  ;;  %v287_v17 = vmax.f32 %v249_v8, %v2314_v13 }
  0x48   :  { %v288_v31 = vmax.f32 %v250_v14, %v2316_v16 }
  0x4a   :  { %697 = vxpose.xlu0.c.b16.end [4/4] (short) (narrow) %v2744_v50, 16 }
  0x4b   :  { %v2318_v18 = vpop.eup %2317 }
  0x4c   :  { %v325_v20 = vmax.f32 %v287_v17, %v2318_v18 }
  0x4d   :  { %v2320_v19 = vpop.eup %2319 }
  0x4e   :  { %v326_v25 = vmax.f32 %v288_v31, %v2320_v19  ;;  %v2322_v26 = vpop.eup %2321 }
  0x4f   :  { %v363_v27 = vmax.f32 %v325_v20, %v2322_v26 }
  0x50   :  { %v2324_v34 = vpop.eup %2323 }
  0x51   :  { %v364_v40 = vmax.f32 %v326_v25, %v2324_v34  ;;  %v367_v29 = vmul.f32 %v363_v27, %v2578_v21  ;;  %v2665_v21 = vld [vmem:[%s3038_s23 + $0x8] sm:$0xff]  }
  0x52   :  { %994 = vxpose.xlu1.c.b16.cont [2/4] (short) (narrow) %v2665_v21, 32 }
  0x53   :  { %v368_v6 = vmul.f32 %v364_v40, %v2583_v24  ;;  %v2671_v24 = vld [vmem:[%s3038_s23 + $0x10] sm:$0xff]  }
  0x55   :  { %v370_v30 = vpack.c.bf16 %v368_v6, %v367_v29  ;;  %v2799_v29 = vld [vmem:[%s3022_s10 + $0x8] sm:$0xff]  }
  0x56   :  { %995 = vxpose.xlu1.c.b16.cont [3/4] (short) (narrow) %v2671_v24, 32 }
  0x57   :  { %2025 = vmatmul.mubr.msk.bf16.vlgmr.msra.gmra.mrb[0].mxu0 %vm386_vm0, %v370_v30 }
  0x58   :  { %2041 = vmatpush3.bf16.msra.mxu0 %v2677_v33 }
  0x59   :  { %2042 = vmatprep.subr.bf16.mxu0 %v2719_v9 }
  0x5a   :  { %996 = vxpose.xlu1.c.b16.end [4/4] (short) (narrow) %v2682_v28, 32 }
  0x5c   :  { %2043 = vmatpush3.bf16.msra.mxu0 %v2719_v9 }
  0x5d   :  { %2064 = vmatprep.subr.bf16.mxu0 %v2349_v63 }
  0xa4   :  { %v2792_v40 = vpop.trf.xlu0 }
 0x12a   :  { %v2026_v1 = vpop.f32.mrb[0].mxu0 }
 0x12b   :  { %v2690_v36 = vadd.f32 %v2026_v1, %v1852_v35  ;;  %v427_v37 = vpop.f32.mrb[1].mxu0 }
 0x12c   :  { %v2692_v38 = vadd.f32 %v1852_v35, %v427_v37  ;;  %v2027_v2 = vpop.f32.mrb[2].mxu0 }
 0x12d   :  { %v2694_v39 = vadd.f32 %v2027_v2, %v1852_v35  ;;  %v430_v15 = vpop.f32.mrb[3].mxu0  ;;  %v444_v42 = vmax.f32 %v2690_v36, 0.0  ;;  %v2808_v2 = vld [vmem:[%s3023_s11] ss:$0 sm:$0xff] }
 0x12e   :  { %v2696_v41 = vadd.f32 %v1852_v35, %v430_v15  ;;  %v442_v44 = vmax.f32 %v2692_v38, 0.0  ;;  %v2895_v38 = vld [vmem:[%s3025_s13] ss:$0 sm:$0xff] }
 0x12f   :  { %v445_v43 = vmax.f32 %v2694_v39, 0.0 }
 0x130   :  { %v443_v46 = vmax.f32 %v2696_v41, 0.0 }
 0x131   :  { %v463_v55 = vpack.c.bf16 %v445_v43, %v444_v42 }
 0x132   :  { %v462_v47 = vpack.c.bf16 %v443_v46, %v442_v44 }
 0x134   :  { %2028 = vmatprep.subr.bf16.mxu1 %v462_v47 }
 0x135   :  { %2029 = vmatpush3.bf16.msra.mxu1 %v462_v47 }
 0x136   :  { %2030 = vmatprep.subr.bf16.mxu1 %v463_v55 }
 0x139   :  { %2031 = vmatpush3.bf16.msra.mxu1 %v463_v55 }
 0x13a   :  { %2052 = vmatprep.subr.bf16.mxu1 %v2349_v63 }
 0x13c   :  { %2033 = vmatmul.mubr.msk.bf16.vlgmr.msra.gmra.mrb[0].mxu1 %vm484_vm1, %v2665_v21 }
 0x13d   :  { %2036 = vmatprep.mubr.msk.bf16.mxu1 %vm484_vm1, %v2671_v24 }
 0x144   :  { %2037 = vmatmul.mubr.msk.bf16.gmra.mrb[4].mxu1 %vm484_vm1, %v2682_v28 }
 0x145   :  { %2060 = vmatprep.mubr.msk.bf16.mxu1 %vm2350_vm2, %v2349_v63 }
 0x20f   :  { %v2034_v51 = vpop.f32.mrb[0].mxu1 }
 0x210   :  { %v531_v52 = vpop.f32.mrb[1].mxu1 }
 0x211   :  { %v2035_v53 = vpop.f32.mrb[2].mxu1 }
 0x212   :  { %v2747_v54 = vpack.c.bf16 %v2035_v53, %v2034_v51  ;;  %v534_v61 = vpop.f32.mrb[3].mxu1 }
 0x213   :  { %v2749_v56 = vpack.c.bf16 %v534_v61, %v531_v52  ;;  %v2814_v61 = vld [vmem:[%s3021_s9] sm:$0xff]  }
 0x215   :  { %2044 = vmatprep.mubr.msk.bf16.mxu0 %vm484_vm1, %v2749_v56 }
 0x216   :  { %2045 = vmatmul.mubr.msk.bf16.vlgmr.msra.gmra.mrb[4].mxu0 %vm484_vm1, %v2747_v54 }
 0x217   :  { %v2038_v22 = vpop.f32.mrb[4].mxu1  ;;  %2065 = vmatpush3.bf16.msra.mxu0 %v2772_v0 }
 0x218   :  { %v547_v57 = vpop.f32.mrb[5].mxu1  ;;  %2066 = vmatprep.subr.bf16.mxu0 %v2349_v63 }
 0x219   :  { %v2039_v58 = vpop.f32.mrb[6].mxu1 }
 0x21a   :  { %v2755_v59 = vpack.c.bf16 %v2039_v58, %v2038_v22  ;;  %v550_v60 = vpop.f32.mrb[7].mxu1  ;;  %v2846_v58 = vpop.trf.xlu1 }
 0x21b   :  { %v2757_v62 = vpack.c.bf16 %v550_v60, %v547_v57  ;;  %2067 = vmatpush3.bf16.msra.mxu0 %v2799_v29  ;;  %v2822_v57 = vld [vmem:[%s3021_s9 + $0x8] sm:$0xff]  }
 0x21d   :  { %2048 = vmatprep.mubr.msk.bf16.mxu0 %vm484_vm1, %v2757_v62 }
 0x21e   :  { %2049 = vmatmul.mubr.msk.bf16.gmra.mrb[8].mxu0 %vm484_vm1, %v2755_v59 }
 0x21f   :  { %2068 = vmatprep.mubr.msk.bf16.mxu0 %vm2350_vm2, %v2349_v63 }
 0x2e9   :  { %v2046_v10 = vpop.f32.mrb[4].mxu0 }
 0x2ea   :  { %v635_v4 = vpop.f32.mrb[5].mxu0  ;;  %v644_v7 = vadd.f32 %v2046_v10, %v2779_v3 }
 0x2eb   :  { %v2047_v5 = vpop.f32.mrb[6].mxu0  ;;  %v636_v23 = vadd.f32 %v2779_v3, %v635_v4 }
 0x2ec   :  { %v647_v11 = vadd.f32 %v2047_v5, %v2779_v3  ;;  %v638_v12 = vpop.f32.mrb[7].mxu0 }
 0x2ed   :  { %v639_v8 = vadd.f32 %v2779_v3, %v638_v12  ;;  %v2850_v12 = vpop.trf.xlu1 }
 0x2ee   :  { %v667_v13 = vpack.c.bf16 %v647_v11, %v644_v7 }
 0x2ef   :  { %v666_v14 = vpack.c.bf16 %v639_v8, %v636_v23  ;;  %v2857_v23 = vld [vmem:[%s3024_s12] sm:$0xff]   ;;  %v2864_v8 = vld [vmem:[%s3024_s12 + $0x8] sm:$0xff]  }
 0x2f1   :  { %v2050_v16 = vpop.f32.mrb[8].mxu0  ;;  %2053 = vmatpush3.bf16.msra.mxu1 %v666_v14 }
 0x2f2   :  { %v651_v17 = vpop.f32.mrb[9].mxu0  ;;  %2054 = vmatprep.subr.bf16.mxu1 %v2349_v63  ;;  %v660_v18 = vadd.f32 %v2050_v16, %v2779_v3 }
 0x2f3   :  { %v2051_v31 = vpop.f32.mrb[10].mxu0  ;;  %v652_v25 = vadd.f32 %v2779_v3, %v651_v17 }
 0x2f4   :  { %v663_v19 = vadd.f32 %v2051_v31, %v2779_v3  ;;  %v654_v20 = vpop.f32.mrb[11].mxu0 }
 0x2f5   :  { %v655_v26 = vadd.f32 %v2779_v3, %v654_v20  ;;  %2055 = vmatpush3.bf16.msra.mxu1 %v667_v13 }
 0x2f6   :  { %v669_v34 = vpack.c.bf16 %v663_v19, %v660_v18  ;;  %2056 = vmatprep.subr.bf16.mxu1 %v2349_v63  ;;  %v2870_v18 = vmul.f32 0.5, %v444_v42  ;;  %v2874_v19 = vmul.f32 0.5, %v445_v43 }
 0x2f7   :  { %v668_v27 = vpack.c.bf16 %v655_v26, %v652_v25  ;;  %v2878_v26 = vmul.f32 0.5, %v442_v44 }
 0x2f9   :  { %2057 = vmatpush3.bf16.msra.mxu1 %v668_v27 }
 0x2fa   :  { %2058 = vmatprep.subr.bf16.mxu1 %v2349_v63 }
 0x2fd   :  { %2059 = vmatpush3.bf16.msra.mxu1 %v669_v34  ;;  %v2882_v34 = vmul.f32 0.5, %v443_v46 }
 0x300   :  { %2061 = vmatmul.mubr.msk.bf16.vlgmr.msra.gmra.mrb[8].mxu1 %vm710_vm3, %v2792_v40 }
 0x301   :  { %2074 = vmatprep.mubr.msk.bf16.mxu1 %vm826_vm4, %v2726_v48 }
 0x3d3   :  { %v748_v6 = vpop.f32.mrb[8].mxu1 }
 0x3d4   :  { %v754_v30 = vpack.c.bf16 %v748_v6, %v748_v6  ;;  %v2062_v35 = vpop.f32.mrb[9].mxu1 }
 0x3d5   :  { %v751_v1 = vpop.f32.mrb[10].mxu1 }
 0x3d6   :  { %v2063_v37 = vpop.f32.mrb[11].mxu1  ;;  %2069 = vmatmul.mubr.msk.bf16.vlgmr.msra.gmra.mrb[12].mxu0 %vm484_vm1, %v754_v30 }
 0x3d7   :  { %2102 = vmatprep.mubr.msk.bf16.mxu0 %vm710_vm3, %v2846_v58 }
 0x4a9   :  { %v815_v15 = vpop.f32.mrb[12].mxu0 }
 0x4aa   :  { %v816_v55 = vadd.f32 %v2808_v2, %v815_v15  ;;  %v2070_v47 = vpop.f32.mrb[13].mxu0 }
 0x4ab   :  { %v818_v51 = vpop.f32.mrb[14].mxu0 }
 0x4ac   :  { %v825_v52 = vpack.c.bf16 %v816_v55, %v816_v55  ;;  %v2071_v53 = vpop.f32.mrb[15].mxu0 }
 0x4ae   :  { %v841_v22 = vsel %vm839_vm5, %v825_v52, 0  ;;  %2232 = vmatprep.subr.msk.bf16.mxu1 %vm839_vm5, %v825_v52 }
 0x4af   :  { %2073 = vmatpush3.bf16.msra.mxu1 %v841_v22 }
 0x4b0   :  { %2082 = vmatprep.subr.bf16.mxu1 %v2814_v61 }
 0x4b2   :  { %2075 = vmatmul.mubr.msk.bf16.vlgmr.msra.gmra.mrb[12].mxu1 %vm826_vm4, %v2732_v49 }
 0x4b3   :  { %2083 = vmatpush3.bf16.msra.mxu1 %v2814_v61  ;;  %2078 = vmatprep.mubr.msk.bf16.mxu1 %vm826_vm4, %v2738_v45 }
 0x4b4   :  { %2084 = vmatprep.subr.bf16.mxu1 %v2822_v57 }
 0x4b7   :  { %2085 = vmatpush3.bf16.msra.mxu1 %v2822_v57 }
 0x4b8   :  { %2126 = vmatprep.subr.bf16.mxu1 %v2677_v33 }
 0x4ba   :  { %2079 = vmatmul.mubr.msk.bf16.gmra.mrb[16].mxu1 %vm826_vm4, %v2744_v50 }
 0x4bb   :  { %2086 = vmatprep.mubr.msk.bf16.mxu1 %vm484_vm1, %v2749_v56 }
 0x4c2   :  { %2087 = vmatmul.mubr.msk.bf16.vlgmr.msra.gmra.mrb[12].mxu1 %vm484_vm1, %v2747_v54 }
 0x4c3   :  { %2090 = vmatprep.mubr.msk.bf16.mxu1 %vm484_vm1, %v2757_v62  ;;  %2127 = vmatpush3.bf16.msra.mxu1 %v2677_v33 }
 0x4c4   :  { %2128 = vmatprep.subr.bf16.mxu1 %v2719_v9 }
 0x4c7   :  { %2129 = vmatpush3.bf16.msra.mxu1 %v2719_v9 }
 0x4c8   :  { %2150 = vmatprep.subr.bf16.mxu1 %v2349_v63 }
 0x4ca   :  { %2091 = vmatmul.mubr.msk.bf16.gmra.mrb[16].mxu1 %vm484_vm1, %v2755_v59 }
 0x595   :  { %v2088_v54 = vpop.f32.mrb[12].mxu1 }
 0x596   :  { %v954_v56 = vpop.f32.mrb[13].mxu1 }
 0x597   :  { %v2089_v60 = vpop.f32.mrb[14].mxu1 }
 0x598   :  { %v986_v62 = vpack.c.bf16 %v2089_v60, %v2088_v54  ;;  %v957_v10 = vpop.f32.mrb[15].mxu1 }
 0x599   :  { %v985_v33 = vpack.c.bf16 %v957_v10, %v954_v56 }
 0x59b   :  { %2094 = vmatprep.subr.bf16.mxu0 %v985_v33 }
 0x59c   :  { %2095 = vmatpush3.bf16.msra.mxu0 %v985_v33 }
 0x59d   :  { %v2092_v4 = vpop.f32.mrb[16].mxu1  ;;  %2096 = vmatprep.subr.bf16.mxu0 %v986_v62 }
 0x59e   :  { %v970_v9 = vpop.f32.mrb[17].mxu1 }
 0x59f   :  { %v2093_v5 = vpop.f32.mrb[18].mxu1 }
 0x5a0   :  { %v988_v7 = vpack.c.bf16 %v2093_v5, %v2092_v4  ;;  %v973_v11 = vpop.f32.mrb[19].mxu1  ;;  %2097 = vmatpush3.bf16.msra.mxu0 %v986_v62 }
 0x5a1   :  { %v987_v59 = vpack.c.bf16 %v973_v11, %v970_v9 }
 0x5a3   :  { %2098 = vmatprep.subr.bf16.mxu0 %v987_v59 }
 0x5a4   :  { %2099 = vmatpush3.bf16.msra.mxu0 %v987_v59 }
 0x5a5   :  { %2100 = vmatprep.subr.bf16.mxu0 %v988_v7 }
 0x5a8   :  { %2101 = vmatpush3.bf16.msra.mxu0 %v988_v7 }
 0x5a9   :  { %2106 = vmatprep.subr.bf16.mxu0 %v2857_v23 }
 0x5ab   :  { %2103 = vmatmul.mubr.msk.bf16.vlgmr.msra.gmra.mrb[16].mxu0 %vm710_vm3, %v2850_v12 }
 0x5ac   :  { %2107 = vmatpush3.bf16.msra.mxu0 %v2857_v23 }
 0x5ad   :  { %2108 = vmatprep.subr.bf16.mxu0 %v2864_v8 }
 0x5b0   :  { %2109 = vmatpush3.bf16.msra.mxu0 %v2864_v8 }
 0x67e   :  { %v2104_v13 = vpop.f32.mrb[16].mxu0 }
 0x67f   :  { %v1066_v14 = vmul.f32 0.5, %v2104_v13  ;;  %v1049_v16 = vpop.f32.mrb[17].mxu0 }
 0x680   :  { %v1064_v17 = vmul.f32 0.5, %v1049_v16  ;;  %v2105_v31 = vpop.f32.mrb[18].mxu0 }
 0x681   :  { %v1067_v20 = vmul.f32 0.5, %v2105_v31  ;;  %v1052_v25 = vpop.f32.mrb[19].mxu0  ;;  %v1074_v6 = vadd.f32 %v2870_v18, %v1066_v14 }
 0x682   :  { %v1065_v27 = vmul.f32 0.5, %v1052_v25  ;;  %v1072_v42 = vadd.f32 %v2878_v26, %v1064_v17 }
 0x683   :  { %v1075_v36 = vadd.f32 %v2874_v19, %v1067_v20 }
 0x684   :  { %v1073_v39 = vadd.f32 %v2882_v34, %v1065_v27 }
 0x685   :  { %v1077_v43 = vpack.c.bf16 %v1075_v36, %v1074_v6 }
 0x686   :  { %v1076_v30 = vpack.c.bf16 %v1073_v39, %v1072_v42 }
 0x688   :  { %2110 = vmatprep.mubr.msk.bf16.mxu0 %vm484_vm1, %v1076_v30 }
 0x689   :  { %2111 = vmatmul.mubr.msk.bf16.vlgmr.msra.gmra.mrb[20].mxu0 %vm484_vm1, %v1077_v43 }
 0x68a   :  { %2118 = vmatprep.mubr.msk.bf16.mxu0 %vm484_vm1, %v2657_v32 }
 0x75c   :  { %v2112_v41 = vpop.f32.mrb[20].mxu0 }
 0x75d   :  { %v1150_v44 = vadd.f32 %v2112_v41, %v2895_v38  ;;  %v1141_v46 = vpop.f32.mrb[21].mxu0 }
 0x75e   :  { %v1142_v35 = vadd.f32 %v2895_v38, %v1141_v46  ;;  %v2113_v1 = vpop.f32.mrb[22].mxu0 }
 0x75f   :  { %v1153_v37 = vadd.f32 %v2113_v1, %v2895_v38  ;;  %v1144_v15 = vpop.f32.mrb[23].mxu0  ;;  %v1158_v47 = vmax.f32 %v1150_v44, 0.0 }
 0x760   :  { %v1145_v55 = vadd.f32 %v2895_v38, %v1144_v15  ;;  %v1156_v32 = vmax.f32 %v1142_v35, 0.0 }
 0x761   :  { %v1159_v51 = vmax.f32 %v1153_v37, 0.0 }
 0x762   :  { %v1157_v52 = vmax.f32 %v1145_v55, 0.0 }
 0x763   :  { %v1161_v53 = vpack.c.bf16 %v1159_v51, %v1158_v47 }
 0x764   :  { %v1160_v22 = vpack.c.bf16 %v1157_v52, %v1156_v32 }
 0x766   :  { %2114 = vmatprep.subr.bf16.mxu0 %v1160_v22 }
 0x767   :  { %2115 = vmatpush3.bf16.msra.mxu0 %v1160_v22 }
 0x768   :  { %2116 = vmatprep.subr.bf16.mxu0 %v1161_v53 }
 0x76b   :  { %2117 = vmatpush3.bf16.msra.mxu0 %v1161_v53 }
 0x76c   :  { %2138 = vmatprep.subr.bf16.mxu0 %v2349_v63 }
 0x76e   :  { %2119 = vmatmul.mubr.msk.bf16.vlgmr.msra.gmra.mrb[24].mxu0 %vm484_vm1, %v2665_v21 }
 0x76f   :  { %2122 = vmatprep.mubr.msk.bf16.mxu0 %vm484_vm1, %v2671_v24 }
 0x776   :  { %2123 = vmatmul.mubr.msk.bf16.gmra.mrb[28].mxu0 %vm484_vm1, %v2682_v28 }
 0x777   :  { %2146 = vmatprep.mubr.msk.bf16.mxu0 %vm2350_vm2, %v2349_v63 }
 0x841   :  { %v2120_v54 = vpop.f32.mrb[24].mxu0 }
 0x842   :  { %v1196_v56 = vpop.f32.mrb[25].mxu0 }
 0x843   :  { %v2121_v60 = vpop.f32.mrb[26].mxu0 }
 0x844   :  { %v2910_v62 = vpack.c.bf16 %v2121_v60, %v2120_v54  ;;  %v1199_v10 = vpop.f32.mrb[27].mxu0 }
 0x845   :  { %v2912_v33 = vpack.c.bf16 %v1199_v10, %v1196_v56 }
 0x847   :  { %2130 = vmatprep.mubr.msk.bf16.mxu1 %vm484_vm1, %v2912_v33 }
 0x848   :  { %2131 = vmatmul.mubr.msk.bf16.vlgmr.msra.gmra.mrb[20].mxu1 %vm484_vm1, %v2910_v62 }
 0x849   :  { %v2124_v21 = vpop.f32.mrb[28].mxu0  ;;  %2151 = vmatpush3.bf16.msra.mxu1 %v2772_v0 }
 0x84a   :  { %v1212_v24 = vpop.f32.mrb[29].mxu0  ;;  %2152 = vmatprep.subr.bf16.mxu1 %v2349_v63 }
 0x84b   :  { %v2125_v28 = vpop.f32.mrb[30].mxu0 }
 0x84c   :  { %v1230_v4 = vpack.c.bf16 %v2125_v28, %v2124_v21  ;;  %v1215_v9 = vpop.f32.mrb[31].mxu0 }
 0x84d   :  { %v1229_v5 = vpack.c.bf16 %v1215_v9, %v1212_v24  ;;  %2153 = vmatpush3.bf16.msra.mxu1 %v2799_v29 }
 0x84f   :  { %2134 = vmatprep.mubr.msk.bf16.mxu1 %vm484_vm1, %v1229_v5 }
 0x850   :  { %2135 = vmatmul.mubr.msk.bf16.gmra.mrb[24].mxu1 %vm484_vm1, %v1230_v4 }
 0x851   :  { %2154 = vmatprep.mubr.msk.bf16.mxu1 %vm2350_vm2, %v2349_v63 }
 0x91b   :  { %v2132_v7 = vpop.f32.mrb[20].mxu1 }
 0x91c   :  { %v1277_v11 = vpop.f32.mrb[21].mxu1  ;;  %v1286_v0 = vadd.f32 %v2132_v7, %v2779_v3 }
 0x91d   :  { %v2133_v59 = vpop.f32.mrb[22].mxu1  ;;  %v1278_v16 = vadd.f32 %v2779_v3, %v1277_v11 }
 0x91e   :  { %v1289_v13 = vadd.f32 %v2133_v59, %v2779_v3  ;;  %v1280_v14 = vpop.f32.mrb[23].mxu1 }
 0x91f   :  { %v1281_v17 = vadd.f32 %v2779_v3, %v1280_v14 }
 0x920   :  { %v1309_v29 = vpack.c.bf16 %v1289_v13, %v1286_v0 }
 0x921   :  { %v1308_v31 = vpack.c.bf16 %v1281_v17, %v1278_v16 }
 0x923   :  { %v2136_v20 = vpop.f32.mrb[24].mxu1  ;;  %2139 = vmatpush3.bf16.msra.mxu0 %v1308_v31 }
 0x924   :  { %v1293_v25 = vpop.f32.mrb[25].mxu1  ;;  %2140 = vmatprep.subr.bf16.mxu0 %v2349_v63  ;;  %v1302_v6 = vadd.f32 %v2136_v20, %v2779_v3 }
 0x925   :  { %v2137_v27 = vpop.f32.mrb[26].mxu1  ;;  %v1294_v39 = vadd.f32 %v2779_v3, %v1293_v25 }
 0x926   :  { %v1305_v36 = vadd.f32 %v2137_v27, %v2779_v3  ;;  %v1296_v42 = vpop.f32.mrb[27].mxu1  ;;  %v2260_v27 = vld [vmem:[%s3028_s16 + $0x8] sm:$0xff]  }
 0x927   :  { %v1297_v43 = vadd.f32 %v2779_v3, %v1296_v42  ;;  %2141 = vmatpush3.bf16.msra.mxu0 %v1309_v29 }
 0x928   :  { %v1311_v30 = vpack.c.bf16 %v1305_v36, %v1302_v6  ;;  %2142 = vmatprep.subr.bf16.mxu0 %v2349_v63 }
 0x929   :  { %v1310_v41 = vpack.c.bf16 %v1297_v43, %v1294_v39 }
 0x92b   :  { %2143 = vmatpush3.bf16.msra.mxu0 %v1310_v41 }
 0x92c   :  { %2144 = vmatprep.subr.bf16.mxu0 %v2349_v63 }
 0x92f   :  { %2145 = vmatpush3.bf16.msra.mxu0 %v1311_v30 }
 0x932   :  { %2147 = vmatmul.mubr.msk.bf16.vlgmr.msra.gmra.mrb[32].mxu0 %vm710_vm3, %v2792_v40 }
 0x933   :  { %2160 = vmatprep.mubr.msk.bf16.mxu0 %vm826_vm4, %v2726_v48 }
 0xa05   :  { %v1346_v44 = vpop.f32.mrb[32].mxu0 }
 0xa06   :  { %v1352_v46 = vpack.c.bf16 %v1346_v44, %v1346_v44  ;;  %v2148_v35 = vpop.f32.mrb[33].mxu0 }
 0xa07   :  { %v1349_v1 = vpop.f32.mrb[34].mxu0 }
 0xa08   :  { %v2149_v3 = vpop.f32.mrb[35].mxu0  ;;  %2155 = vmatmul.mubr.msk.bf16.vlgmr.msra.gmra.mrb[28].mxu1 %vm484_vm1, %v1352_v46 }
 0xa09   :  { %2188 = vmatprep.mubr.msk.bf16.mxu1 %vm710_vm3, %v2846_v58 }
 0xadb   :  { %v1390_v37 = vpop.f32.mrb[28].mxu1 }
 0xadc   :  { %v1391_v63 = vadd.f32 %v2808_v2, %v1390_v37  ;;  %v2156_v15 = vpop.f32.mrb[29].mxu1 }
 0xadd   :  { %v1393_v55 = vpop.f32.mrb[30].mxu1  ;;  %v1924_v15 = vld [vmem:[%s3029_s17] ss:$0 sm:$0xff] }
 0xade   :  { %v1396_v47 = vpack.c.bf16 %v1391_v63, %v1391_v63  ;;  %v2157_v40 = vpop.f32.mrb[31].mxu1 }
 0xae0   :  { %v1398_v51 = vsel %vm839_vm5, %v1396_v47, 0  ;;  %2233 = vmatprep.subr.msk.bf16.mxu0 %vm839_vm5, %v1396_v47 }
 0xae1   :  { %2159 = vmatpush3.bf16.msra.mxu0 %v1398_v51 }
 0xae2   :  { %2168 = vmatprep.subr.bf16.mxu0 %v2814_v61 }
 0xae4   :  { %2161 = vmatmul.mubr.msk.bf16.vlgmr.msra.gmra.mrb[36].mxu0 %vm826_vm4, %v2732_v49 }
 0xae5   :  { %2169 = vmatpush3.bf16.msra.mxu0 %v2814_v61  ;;  %2164 = vmatprep.mubr.msk.bf16.mxu0 %vm826_vm4, %v2738_v45 }
 0xae6   :  { %2170 = vmatprep.subr.bf16.mxu0 %v2822_v57 }
 0xae9   :  { %2171 = vmatpush3.bf16.msra.mxu0 %v2822_v57 }
 0xaec   :  { %2165 = vmatmul.mubr.msk.bf16.gmra.mrb[40].mxu0 %vm826_vm4, %v2744_v50 }
 0xaed   :  { %2172 = vmatprep.mubr.msk.bf16.mxu0 %vm484_vm1, %v2912_v33 }
 0xaf4   :  { %2173 = vmatmul.mubr.msk.bf16.vlgmr.msra.gmra.mrb[36].mxu0 %vm484_vm1, %v2910_v62 }
 0xaf5   :  { %2176 = vmatprep.mubr.msk.bf16.mxu0 %vm484_vm1, %v1229_v5 }
 0xafc   :  { %2177 = vmatmul.mubr.msk.bf16.gmra.mrb[40].mxu0 %vm484_vm1, %v1230_v4 }
 0xbc7   :  { %v2174_v48 = vpop.f32.mrb[36].mxu0 }
 0xbc8   :  { %v1499_v49 = vpop.f32.mrb[37].mxu0 }
 0xbc9   :  { %v2175_v45 = vpop.f32.mrb[38].mxu0 }
 0xbca   :  { %v1531_v2 = vpack.c.bf16 %v2175_v45, %v2174_v48  ;;  %v1502_v61 = vpop.f32.mrb[39].mxu0 }
 0xbcb   :  { %v1530_v58 = vpack.c.bf16 %v1502_v61, %v1499_v49 }
 0xbcd   :  { %2180 = vmatprep.subr.bf16.mxu1 %v1530_v58 }
 0xbce   :  { %2181 = vmatpush3.bf16.msra.mxu1 %v1530_v58 }
 0xbcf   :  { %v2178_v57 = vpop.f32.mrb[40].mxu0  ;;  %2182 = vmatprep.subr.bf16.mxu1 %v1531_v2 }
 0xbd0   :  { %v1515_v50 = vpop.f32.mrb[41].mxu0 }
 0xbd1   :  { %v2179_v32 = vpop.f32.mrb[42].mxu0 }
 0xbd2   :  { %v1533_v52 = vpack.c.bf16 %v2179_v32, %v2178_v57  ;;  %v1518_v53 = vpop.f32.mrb[43].mxu0  ;;  %2183 = vmatpush3.bf16.msra.mxu1 %v1531_v2 }
 0xbd3   :  { %v1532_v22 = vpack.c.bf16 %v1518_v53, %v1515_v50 }
 0xbd5   :  { %2184 = vmatprep.subr.bf16.mxu1 %v1532_v22 }
 0xbd6   :  { %2185 = vmatpush3.bf16.msra.mxu1 %v1532_v22 }
 0xbd7   :  { %2186 = vmatprep.subr.bf16.mxu1 %v1533_v52 }
 0xbda   :  { %2187 = vmatpush3.bf16.msra.mxu1 %v1533_v52 }
 0xbdb   :  { %2192 = vmatprep.subr.bf16.mxu1 %v2857_v23 }
 0xbdd   :  { %2189 = vmatmul.mubr.msk.bf16.vlgmr.msra.gmra.mrb[32].mxu1 %vm710_vm3, %v2850_v12 }
 0xbde   :  { %2193 = vmatpush3.bf16.msra.mxu1 %v2857_v23 }
 0xbdf   :  { %2194 = vmatprep.subr.bf16.mxu1 %v2864_v8 }
 0xbe2   :  { %2195 = vmatpush3.bf16.msra.mxu1 %v2864_v8  ;;  %v2257_v8 = vld [vmem:[%s3026_s14] sm:$0xff]  }
 0xbe3   :  { %2200 = vmatprep.subr.bf16.mxu1 %v2257_v8 }
 0xcb0   :  { %v2190_v54 = vpop.f32.mrb[32].mxu1 }
 0xcb1   :  { %v1585_v56 = vmul.f32 0.5, %v2190_v54  ;;  %v1568_v60 = vpop.f32.mrb[33].mxu1 }
 0xcb2   :  { %v1583_v62 = vmul.f32 0.5, %v1568_v60  ;;  %v2191_v10 = vpop.f32.mrb[34].mxu1 }
 0xcb3   :  { %v1586_v33 = vmul.f32 0.5, %v2191_v10  ;;  %v1571_v21 = vpop.f32.mrb[35].mxu1  ;;  %v1589_v28 = vadd.f32 %v1585_v56, %v2870_v18  ;;  %v2258_v18 = vld [vmem:[%s3026_s14 + $0x8] sm:$0xff]  }
 0xcb4   :  { %v1584_v24 = vmul.f32 0.5, %v1571_v21  ;;  %v1587_v12 = vadd.f32 %v1583_v62, %v2878_v26 }
 0xcb5   :  { %v1590_v4 = vadd.f32 %v1586_v33, %v2874_v19  ;;  %v2259_v19 = vld [vmem:[%s3028_s16] sm:$0xff]  }
 0xcb6   :  { %v1588_v23 = vadd.f32 %v1584_v24, %v2882_v34  ;;  %2208 = vmatprep.subr.bf16.mxu0 %v2259_v19 }
 0xcb7   :  { %v1592_v9 = vpack.c.bf16 %v1590_v4, %v1589_v28  ;;  %2209 = vmatpush3.bf16.msra.mxu0 %v2259_v19 }
 0xcb8   :  { %v1591_v5 = vpack.c.bf16 %v1588_v23, %v1587_v12  ;;  %2210 = vmatprep.subr.bf16.mxu0 %v2260_v27 }
 0xcba   :  { %2196 = vmatprep.mubr.msk.bf16.mxu1 %vm484_vm1, %v1591_v5 }
 0xcbb   :  { %2197 = vmatmul.mubr.msk.bf16.vlgmr.msra.gmra.mrb[36].mxu1 %vm484_vm1, %v1592_v9  ;;  %2211 = vmatpush3.bf16.msra.mxu0 %v2260_v27 }
 0xcbc   :  { %2201 = vmatpush3.bf16.msra.mxu1 %v2257_v8 }
 0xcbd   :  { %2202 = vmatprep.subr.bf16.mxu1 %v2258_v18 }
 0xcc0   :  { %2203 = vmatpush3.bf16.msra.mxu1 %v2258_v18 }
 0xd8e   :  { %v2198_v26 = vpop.f32.mrb[36].mxu1 }
 0xd8f   :  { %v1642_v34 = vadd.f32 %v2198_v26, %v2895_v38  ;;  %v1633_v7 = vpop.f32.mrb[37].mxu1 }
 0xd90   :  { %v1634_v11 = vadd.f32 %v2895_v38, %v1633_v7  ;;  %v2199_v59 = vpop.f32.mrb[38].mxu1 }
 0xd91   :  { %v1645_v0 = vadd.f32 %v2199_v59, %v2895_v38  ;;  %v1636_v13 = vpop.f32.mrb[39].mxu1  ;;  %v1650_v16 = vmax.f32 %v1642_v34, 0.0 }
 0xd92   :  { %v1637_v14 = vadd.f32 %v2895_v38, %v1636_v13  ;;  %v1648_v29 = vmax.f32 %v1634_v11, 0.0  ;;  %v1919_v38 = vld [vmem:[%s3027_s15] ss:$0 sm:$0xff] }
 0xd93   :  { %v1651_v17 = vmax.f32 %v1645_v0, 0.0 }
 0xd94   :  { %v1649_v31 = vmax.f32 %v1637_v14, 0.0 }
 0xd95   :  { %v1653_v20 = vpack.c.bf16 %v1651_v17, %v1650_v16 }
 0xd96   :  { %v1652_v25 = vpack.c.bf16 %v1649_v31, %v1648_v29 }
 0xd98   :  { %2204 = vmatprep.mubr.msk.bf16.mxu1 %vm484_vm1, %v1652_v25 }
 0xd99   :  { %2205 = vmatmul.mubr.msk.bf16.vlgmr.msra.gmra.mrb[40].mxu1 %vm484_vm1, %v1653_v20 }
 0xe6c   :  { %v2206_v6 = vpop.f32.mrb[40].mxu1 }
 0xe6d   :  { %v1726_v36 = vadd.f32 %v2206_v6, %v1919_v38  ;;  %v1717_v42 = vpop.f32.mrb[41].mxu1 }
 0xe6e   :  { %v1718_v39 = vadd.f32 %v1919_v38, %v1717_v42  ;;  %v2207_v43 = vpop.f32.mrb[42].mxu1 }
 0xe6f   :  { %v1729_v30 = vadd.f32 %v2207_v43, %v1919_v38  ;;  %v1720_v41 = vpop.f32.mrb[43].mxu1  ;;  %v1734_v46 = vmax.f32 %v1726_v36, 0.0 }
 0xe70   :  { %v1721_v44 = vadd.f32 %v1919_v38, %v1720_v41  ;;  %v1732_v1 = vmax.f32 %v1718_v39, 0.0 }
 0xe71   :  { %v1735_v35 = vmax.f32 %v1729_v30, 0.0 }
 0xe72   :  { %v1733_v3 = vmax.f32 %v1721_v44, 0.0 }
 0xe73   :  { %v1737_v37 = vpack.c.bf16 %v1735_v35, %v1734_v46 }
 0xe74   :  { %v1736_v63 = vpack.c.bf16 %v1733_v3, %v1732_v1 }
 0xe76   :  { %2212 = vmatprep.mubr.msk.bf16.mxu0 %vm484_vm1, %v1736_v63 }
 0xe77   :  { %2213 = vmatmul.mubr.msk.bf16.vlgmr.msra.gmra.mrb[44].mxu0 %vm484_vm1, %v1737_v37 }
 0xf4a   :  { %v2214_v55 = vpop.f32.mrb[44].mxu0 }
 0xf4b   :  { %v1810_v47 = vadd.f32 %v2214_v55, %v1924_v15  ;;  %v1801_v40 = vpop.f32.mrb[45].mxu0 }
 0xf4c   :  { %v1802_v51 = vadd.f32 %v1924_v15, %v1801_v40  ;;  %v2215_v48 = vpop.f32.mrb[46].mxu0 }
 0xf4d   :  { %1818 = vst [vmem:[#allocation2 + $0x10] sm:$0xff] %v1810_v47  ;;  %v1813_v49 = vadd.f32 %v2215_v48, %v1924_v15  ;;  %v1804_v45 = vpop.f32.mrb[47].mxu0 }
 0xf4e   :  { %1816 = vst [vmem:[#allocation2] sm:$0xff] %v1802_v51  ;;  %v1805_v2 = vadd.f32 %v1924_v15, %v1804_v45 }
 0xf4f   :  { %1819 = vst [vmem:[#allocation2 + $0x18] sm:$0xff] %v1813_v49 }
 0xf50   :  { %1817 = vst [vmem:[#allocation2 + $0x8] sm:$0xff] %v1805_v2 }
 0xf51   :  { %2336 = shalt.err (!%p2333_p4)
}
 0xf52   :  { %s2337_s29 = scalar_lea.hbm %s3030_s18, 512 }
 0xf53   :  { %p2338_p5 = scmp.ne.s32.totalorder %s3030_s18, %s2337_s29  ;;  %p2341_p6 = scmp.lt.u32.totalorder %s2337_s29, %s3030_s18 }
 0xf55   :  { %p2343_p7 = pnand %p2341_p6, %p2338_p5 }
 0xf57   :  { %2346 = shalt.err (!%p2343_p7)
}
 0xf58   :  { %s2352_s11 = smov 128   ;;  %s2353_s3 = smov 8  }
 0xf59   :  { %1831 = dma.vmem_to_hbm [thread:$0]  %s1826_s27, 512, %s3030_s18, [#allocation3], %s2352_s11, %s2352_s11, %s2353_s3  }
 0xf5a   :  { %2347 = dma.done.wait [#allocation3], 512  }
 0xf5b   :  { %2348 = vsyncadd [#allocation3], 4294966784 }
 0xf5c   :  { %1835 = vsyncpa [#allocation3], 1 }

</bundles_post_ra>
